<compile_context>
chip_gen: v6e
topology: v6e:2x2x1
jax: 0.10.0
libtpu: 0.0.40
codegen_flags: <defaults>
</compile_context>

<pallas_src>
import jax
import jax.numpy as jnp
from jax import lax
from jax.experimental import pallas as pl
from jax.experimental.pallas import tpu as pltpu


LANE = 128                          # lane width / MXU alignment
_VMEM_LIMIT = 32 * 1024 * 1024      # explicit scoped-VMEM budget (all gens)


# ----------------------------- Pallas kernels ------------------------------ #

def _matmul_bias_lrelu_kernel(p_ref, w_ref, b_ref, o_ref, acc_ref):
    """One (tm, tn) output tile of LeakyReLU(P @ W + bias); BN scale folded in W."""
    @pl.when(pl.program_id(2) == 0)
    def _():
        acc_ref[...] = jnp.zeros_like(acc_ref)

    acc_ref[...] += jnp.dot(p_ref[...], w_ref[...],
                            preferred_element_type=jnp.float32)

    @pl.when(pl.program_id(2) == pl.num_programs(2) - 1)
    def _():
        y = acc_ref[...] + b_ref[...]          # f32 epilogue
        y = jnp.where(y > 0, y, 0.1 * y)       # LeakyReLU(0.1)
        o_ref[...] = y.astype(o_ref.dtype)


def _conv3x3_residual_kernel(hh_ref, w_ref, b_ref, y_ref, o_ref, acc_ref):
    """out = y + LeakyReLU(conv3x3_pad1(h) + bias) for one (th, W) row tile.

    hh_ref: (3, th+2, W, Ct)  column-shifted, row-haloed windows of the padded
                              1x1-branch output (leading index = tap dj).
    w_ref : (9, Ct, C)        3x3 weights, taps major, BN scale folded (bf16).
    b_ref : (1, C)            folded BN bias (f32).
    y_ref : (th, W, C)        skip-connection input (bf16).
    """
    th, ww, c = o_ref.shape
    ct = hh_ref.shape[-1]

    acc_ref[...] = jnp.zeros_like(acc_ref)
    for dj in range(3):
        hcol = hh_ref[dj]                                   # (th+2, W, Ct)
        for di in range(3):
            lhs = hcol[di:di + th].reshape(th * ww, ct)     # free row slice
            acc_ref[...] += jnp.dot(lhs, w_ref[3 * di + dj],
                                    preferred_element_type=jnp.float32)

    z = acc_ref[...] + b_ref[...]
    z = jnp.where(z > 0, z, 0.1 * z)
    z = z.reshape(th, ww, c) + y_ref[...].astype(jnp.float32)
    o_ref[...] = z.astype(o_ref.dtype)


# ------------------------------ tiling helpers ------------------------------ #

def _round_up(x, m):
    return (x + m - 1) // m * m


def _pick_tile(dim, candidates, allow_pad=True):
    """Largest candidate tile; prefer exact division, allow <=1 tile of pad."""
    for t in candidates:
        if dim % t == 0:
            return t, dim
        if allow_pad and dim >= 8 * t:          # <=12.5% pad waste
            return t, _round_up(dim, t)
    base = candidates[-1]
    return base, _round_up(dim, base)


def _split_for_megacore(tm, mp, tn, np_):
    """v7x has 2 TensorCores: keep the parallel (i, j) grid >= 2 programs."""
    if (mp // tm) * (np_ // tn) < 2:
        if tm >= 256:
            tm //= 2
        elif tn >= 256:
            tn //= 2
    return tm, tn


def _pick_row_tile(h, w, ct, c, budget=8 * 1024 * 1024):
    """Largest divisor of h whose per-step VMEM footprint stays under budget."""
    def per_step(t):
        hh = 3 * (t + 2) * w * ct * 2           # halo window (bf16, 3 col shifts)
        yio = 2 * t * w * c * 2                 # residual in + out (bf16)
        acc = t * w * c * 4                     # f32 accumulator scratch
        return 2 * (hh + yio) + acc             # double-buffered streams
    th = h
    while th > 1 and per_step(th) > budget:
        nt = th - 1
        while nt > 1 and h % nt:
            nt -= 1
        th = nt
    return th


# --------------------------- fused matmul wrapper --------------------------- #

def _matmul_bias_lrelu(patches, w2, bias, *, out_dtype=jnp.bfloat16):
    """out = LeakyReLU(patches @ w2 + bias), tiled MXU matmul (K, N 128-aligned)."""
    m, k = patches.shape
    n = w2.shape[1]
    assert k % LANE == 0 and n % LANE == 0

    tm, mp = _pick_tile(m, (1024, 512, 256, 128))
    tk, kp = _pick_tile(k, (512, 256, 128))
    tn, _ = _pick_tile(n, (512, 256, 128), allow_pad=False)
    tm, tn = _split_for_megacore(tm, mp, tn, n)

    if mp != m:
        patches = jnp.pad(patches, ((0, mp - m), (0, 0)))
    if kp != k:
        patches = jnp.pad(patches, ((0, 0), (0, kp - k)))
        w2 = jnp.pad(w2, ((0, kp - k), (0, 0)))

    grid = (mp // tm, n // tn, kp // tk)
    cost = pl.CostEstimate(
        flops=2 * mp * kp * n, transcendentals=0,
        bytes_accessed=int(mp * kp * 2 + kp * n * 2 + n * 4
                           + mp * n * jnp.dtype(out_dtype).itemsize))

    out = pl.pallas_call(
        _matmul_bias_lrelu_kernel,
        out_shape=jax.ShapeDtypeStruct((mp, n), out_dtype),
        grid_spec=pltpu.PrefetchScalarGridSpec(
            num_scalar_prefetch=0,
            grid=grid,
            in_specs=[
                pl.BlockSpec((tm, tk), lambda i, j, kk: (i, kk)),
                pl.BlockSpec((tk, tn), lambda i, j, kk: (kk, j)),
                pl.BlockSpec((1, tn), lambda i, j, kk: (0, j)),
            ],
            out_specs=pl.BlockSpec((tm, tn), lambda i, j, kk: (i, j)),
            scratch_shapes=[pltpu.VMEM((tm, tn), jnp.float32)],
        ),
        compiler_params=pltpu.CompilerParams(
            dimension_semantics=("parallel", "parallel", "arbitrary"),
            vmem_limit_bytes=_VMEM_LIMIT),
        cost_estimate=cost,
    )(patches, w2, bias)

    return out[:m]


# ------------------------------ layer wrappers ------------------------------ #

def cbl_1x1(x, w, bias):
    """1x1 CBL: pure channel matmul (no im2col), bf16 activations."""
    n, h, wd, cin = x.shape
    cout = w.shape[-1]
    out = _matmul_bias_lrelu(x.reshape(n * h * wd, cin), w.reshape(cin, cout), bias)
    return out.reshape(n, h, wd, cout)


def cbl_downsample(x_nhwc, w, bias):
    """3x3 stride-2 pad-1 CBL via im2col + fused matmul (runs once per block)."""
    # TODO(synk): replace this XLA-side im2col with an in-kernel strided tap loop.
    n, hgt, wdt, cin = x_nhwc.shape
    kh, kw, _, cout_p = w.shape
    stride, pad = 2, 1

    x_bf = x_nhwc.astype(jnp.bfloat16)
    if cin >= LANE and cin % LANE:
        cpad = _round_up(cin, LANE)
        x_bf = jnp.pad(x_bf, ((0, 0), (0, 0), (0, 0), (0, cpad - cin)))
        w = jnp.pad(w, ((0, 0), (0, 0), (0, cpad - cin), (0, 0)))
        cin = cpad

    xp = jnp.pad(x_bf, ((0, 0), (pad, pad), (pad, pad), (0, 0)))
    hout = (hgt + 2 * pad - kh) // stride + 1
    wout = (wdt + 2 * pad - kw) // stride + 1
    pieces = [xp[:, i:i + stride * hout:stride, j:j + stride * wout:stride, :]
              for i in range(kh) for j in range(kw)]
    patches = jnp.concatenate(pieces, axis=-1).reshape(n * hout * wout, kh * kw * cin)

    k = kh * kw * cin
    kp = _round_up(k, LANE)
    w2 = w.reshape(k, cout_p)
    if kp != k:
        patches = jnp.pad(patches, ((0, 0), (0, kp - k)))
        w2 = jnp.pad(w2, ((0, kp - k), (0, 0)))

    out = _matmul_bias_lrelu(patches, w2, bias)
    return out.reshape(n, hout, wout, cout_p)


def conv3x3_residual(h, y, w_taps, bias):
    """y + LeakyReLU(conv3x3_pad1(h) + bias), fused in one pallas_call (no im2col)."""
    n, H, W, ct = h.shape
    c = y.shape[-1]
    th = _pick_row_tile(H, W, ct, c)
    nrt = H // th

    hp = jnp.pad(h, ((0, 0), (1, 1), (1, 1), (0, 0)))          # conv padding = 1
    # 3 column-shifted views (tap dj) so the kernel only slices along rows
    # (which is free on TPU); rows are tiled with a 2-row halo.
    cols = jnp.stack([hp[:, :, dj:dj + W, :] for dj in range(3)], axis=1)
    if nrt == 1:
        tiles = cols[:, None]
    else:
        tiles = jnp.stack(
            [cols[:, :, i * th:i * th + th + 2] for i in range(nrt)], axis=1)
    tiles = tiles.reshape(n * nrt, 3, th + 2, W, ct)
    y_t = y.reshape(n * nrt, th, W, c)

    out = pl.pallas_call(
        _conv3x3_residual_kernel,
        out_shape=jax.ShapeDtypeStruct((n * nrt, th, W, c), y.dtype),
        grid_spec=pltpu.PrefetchScalarGridSpec(
            num_scalar_prefetch=0,
            grid=(n * nrt,),
            in_specs=[
                pl.BlockSpec((None, 3, th + 2, W, ct), lambda g: (g, 0, 0, 0, 0)),
                pl.BlockSpec((9, ct, c), lambda g: (0, 0, 0)),
                pl.BlockSpec((1, c), lambda g: (0, 0)),
                pl.BlockSpec((None, th, W, c), lambda g: (g, 0, 0, 0)),
            ],
            out_specs=pl.BlockSpec((None, th, W, c), lambda g: (g, 0, 0, 0)),
            scratch_shapes=[pltpu.VMEM((th * W, c), jnp.float32)],
        ),
        compiler_params=pltpu.CompilerParams(
            dimension_semantics=("parallel",),
            vmem_limit_bytes=_VMEM_LIMIT),
    )(tiles, w_taps, bias, y_t)

    return out.reshape(n, H, W, c)


# --------------------------- parameter preparation -------------------------- #

def _fold_bn(gamma, beta, mean, var, eps=1e-5):
    scale = gamma / jnp.sqrt(var + eps)
    bias = beta - mean * scale
    return scale, bias


def _prep_cbl(w, scale, bias, in_pad, out_pad):
    """Fold BN scale into the conv weight (f32), pad channels, cast to bf16."""
    kh, kw, cin, cout = w.shape
    wf = w * scale.reshape(1, 1, 1, cout)
    wf = jnp.pad(wf, ((0, 0), (0, 0), (0, in_pad - cin), (0, out_pad - cout)))
    bf = jnp.pad(bias, (0, out_pad - cout)).reshape(1, out_pad).astype(jnp.float32)
    return wf.astype(jnp.bfloat16), bf


def init_residual_block_params(key, in_channels, out_channels, num_residual):
    def conv_bn(key, cin, cout, k):
        kw_, kg, kb, km, kv = jax.random.split(key, 5)
        w = jax.random.normal(kw_, (k, k, cin, cout), jnp.float32) * 0.1
        gamma = jax.random.uniform(kg, (cout,), jnp.float32, 0.5, 1.5)
        beta = jax.random.normal(kb, (cout,), jnp.float32) * 0.05
        mean = jax.random.normal(km, (cout,), jnp.float32) * 0.05
        var = jax.random.uniform(kv, (cout,), jnp.float32, 0.5, 1.5)
        scale, bias = _fold_bn(gamma, beta, mean, var)
        return w, scale, bias

    keys = jax.random.split(key, 1 + 2 * num_residual)
    params = {"down": conv_bn(keys[0], in_channels, out_channels, 3),
              "residuals": []}
    tmp = out_channels // 2
    for r in range(num_residual):
        c1 = conv_bn(keys[1 + 2 * r], out_channels, tmp, 1)
        c2 = conv_bn(keys[2 + 2 * r], tmp, out_channels, 3)
        params["residuals"].append((c1, c2))
    return params


# ------------------------------- forward pass ------------------------------ #

@jax.jit
def residual_block_forward(x_nchw, params):
    w_d, s_d, b_d = params["down"]
    cin, cout = w_d.shape[2], w_d.shape[3]
    cp = _round_up(cout, LANE)                        # pipeline channel padding
    ctp = _round_up(max(cout // 2, 1), LANE)

    x = jnp.transpose(x_nchw, (0, 2, 3, 1))           # NCHW -> NHWC

    wd, bd = _prep_cbl(w_d, s_d, b_d, cin, cp)
    y = cbl_downsample(x, wd, bd)                     # bf16, channel-padded NHWC

    for (w1, s1, b1), (w2, s2, b2) in params["residuals"]:
        w1p, b1p = _prep_cbl(w1, s1, b1, cp, ctp)     # 1x1: C -> C/2
        w2p, b2p = _prep_cbl(w2, s2, b2, ctp, cp)     # 3x3: C/2 -> C
        h = cbl_1x1(y, w1p, b1p)
        y = conv3x3_residual(h, y, w2p.reshape(9, ctp, cp), b2p)

    y = y[..., :cout].astype(x_nchw.dtype)            # drop channel padding
    return jnp.transpose(y, (0, 3, 1, 2))             # back to NCHW


# --------------------------- pure-JAX reference ----------------------------- #

def _ref_cbl(x, w, s, b, stride, padding):
    y = lax.conv_general_dilated(
        x, w, window_strides=(stride, stride),
        padding=((padding, padding), (padding, padding)),
        dimension_numbers=("NHWC", "HWIO", "NHWC"))
    y = y * s.reshape(1, 1, 1, -1) + b.reshape(1, 1, 1, -1)
    return jnp.where(y > 0, y, 0.1 * y)


def reference_forward(x_nchw, params):
    x = jnp.transpose(x_nchw, (0, 2, 3, 1))
    w, s, b = params["down"]
    y = _ref_cbl(x, w, s, b, 2, 1)
    for (w1, s1, b1), (w2, s2, b2) in params["residuals"]:
        h = _ref_cbl(y, w1, s1, b1, 1, 0)
        y = y + _ref_cbl(h, w2, s2, b2, 1, 1)
    return jnp.transpose(y, (0, 3, 1, 2))


# ----------------------------------- main ----------------------------------- #

if __name__ == "__main__":
    key = jax.random.PRNGKey(0)
    kx, kp = jax.random.split(key)

    # small shapes consistent with the module: batch=2, in_ch=4, out_ch=8,
    # spatial 16x16, num_residual=2
    in_channels, out_channels, num_residual = 4, 8, 2
    x = jax.random.normal(kx, (2, in_channels, 16, 16), jnp.float32)

    params = init_residual_block_params(kp, in_channels, out_channels, num_residual)

    out = residual_block_forward(x, params)
    out = jax.block_until_ready(out)

    assert out.shape == (2, out_channels, 8, 8), out.shape
    assert jnp.isfinite(out).all()

    # loose tolerance: the Pallas path runs matmuls in bf16 on the MXU and
    # carries inter-layer activations in bf16.
    ref = jax.block_until_ready(reference_forward(x, params))
    assert jnp.allclose(out, ref, rtol=1e-1, atol=1e-1), float(
        jnp.max(jnp.abs(out - ref)))

    print("KERNEL_OK")
</pallas_src>

<mosaic_0001>
module attributes {stable_mosaic.version = 11 : i64} {
  func.func @_matmul_bias_lrelu_kernel(%arg0: i32, %arg1: i32, %arg2: i32, %arg3: memref<128x128xbf16, #tpu.memory_space<vmem>>, %arg4: memref<128x128xbf16, #tpu.memory_space<vmem>>, %arg5: memref<1x128xf32, #tpu.memory_space<vmem>>, %arg6: memref<128x128xbf16, #tpu.memory_space<vmem>>, %arg7: memref<128x128xf32, #tpu.memory_space<vmem>>) attributes {dimension_semantics = [#tpu.dimension_semantics<parallel>, #tpu.dimension_semantics<parallel>, #tpu.dimension_semantics<arbitrary>], iteration_bounds = array<i64: 1, 1, 1>, scalar_prefetch = 0 : i64, scratch_operands = 1 : i64, tpu.core_type = #tpu.core_type<tc>, window_params = [{transform_indices = @transform_0, window_bounds = array<i64: 128, 128>}, {transform_indices = @transform_1, window_bounds = array<i64: 128, 128>}, {transform_indices = @transform_2, window_bounds = array<i64: 1, 128>}, {transform_indices = @transform_3, window_bounds = array<i64: 128, 128>}]} {
    %c0_i32 = arith.constant 0 : i32
    %0 = arith.cmpi eq, %arg2, %c0_i32 : i32
    %1 = arith.extui %0 : i1 to i32
    %c0_i32_0 = arith.constant 0 : i32
    %2 = arith.cmpi ne, %1, %c0_i32_0 : i32
    scf.if %2 {
      %cst_10 = arith.constant 0.000000e+00 : f32
      %12 = vector.broadcast %cst_10 : f32 to vector<128x128xf32>
      %c0_11 = arith.constant 0 : index
      %c0_12 = arith.constant 0 : index
      %13 = vector.load %arg7[%c0_11, %c0_12] : memref<128x128xf32, #tpu.memory_space<vmem>>, vector<128x128xf32>
      tpu.vector_store %arg7[%c0_11, %c0_12], %12 {strides = array<i32>} : memref<128x128xf32, #tpu.memory_space<vmem>>, vector<128x128xf32>,
    } else {
    }
    %c0 = arith.constant 0 : index
    %c0_1 = arith.constant 0 : index
    %3 = vector.load %arg7[%c0, %c0_1] : memref<128x128xf32, #tpu.memory_space<vmem>>, vector<128x128xf32>
    %c0_2 = arith.constant 0 : index
    %c0_3 = arith.constant 0 : index
    %4 = vector.load %arg3[%c0_2, %c0_3] : memref<128x128xbf16, #tpu.memory_space<vmem>>, vector<128x128xbf16>
    %c0_4 = arith.constant 0 : index
    %c0_5 = arith.constant 0 : index
    %5 = vector.load %arg4[%c0_4, %c0_5] : memref<128x128xbf16, #tpu.memory_space<vmem>>, vector<128x128xbf16>
    %cst = arith.constant dense<0.000000e+00> : vector<128x128xf32>
    %6 = tpu.matmul %4, %5, %cst {dimension_numbers = #tpu.dot_dimension_numbers<[1], [0], [0], [1], [0, 0, 1, 1], [], []>} : vector<128x128xbf16>, vector<128x128xbf16>, vector<128x128xf32> -> vector<128x128xf32>
    %7 = arith.addf %3, %6 : vector<128x128xf32>
    %c0_6 = arith.constant 0 : index
    %c0_7 = arith.constant 0 : index
    %8 = vector.load %arg7[%c0_6, %c0_7] : memref<128x128xf32, #tpu.memory_space<vmem>>, vector<128x128xf32>
    tpu.vector_store %arg7[%c0_6, %c0_7], %7 {strides = array<i32>} : memref<128x128xf32, #tpu.memory_space<vmem>>, vector<128x128xf32>,
    %c0_i32_8 = arith.constant 0 : i32
    %9 = arith.cmpi eq, %arg2, %c0_i32_8 : i32
    %10 = arith.extui %9 : i1 to i32
    %c0_i32_9 = arith.constant 0 : i32
    %11 = arith.cmpi ne, %10, %c0_i32_9 : i32
    scf.if %11 {
      %c0_10 = arith.constant 0 : index
      %c0_11 = arith.constant 0 : index
      %12 = vector.load %arg7[%c0_10, %c0_11] : memref<128x128xf32, #tpu.memory_space<vmem>>, vector<128x128xf32>
      %c0_12 = arith.constant 0 : index
      %c0_13 = arith.constant 0 : index
      %13 = vector.load %arg5[%c0_12, %c0_13] : memref<1x128xf32, #tpu.memory_space<vmem>>, vector<1x128xf32>
      %14 = vector.broadcast %13 : vector<1x128xf32> to vector<128x128xf32>
      %15 = arith.addf %12, %14 : vector<128x128xf32>
      %cst_14 = arith.constant 0.000000e+00 : f32
      %16 = vector.broadcast %cst_14 : f32 to vector<128x128xf32>
      %17 = arith.cmpf ogt, %15, %16 : vector<128x128xf32>
      %cst_15 = arith.constant 1.000000e-01 : f32
      %18 = vector.broadcast %cst_15 : f32 to vector<128x128xf32>
      %19 = arith.mulf %18, %15 : vector<128x128xf32>
      %20 = arith.select %17, %15, %19 : vector<128x128xi1>, vector<128x128xf32>
      %21 = arith.truncf %20 : vector<128x128xf32> to vector<128x128xbf16>
      %c0_16 = arith.constant 0 : index
      %c0_17 = arith.constant 0 : index
      %22 = vector.load %arg6[%c0_16, %c0_17] : memref<128x128xbf16, #tpu.memory_space<vmem>>, vector<128x128xbf16>
      tpu.vector_store %arg6[%c0_16, %c0_17], %21 {strides = array<i32>} : memref<128x128xbf16, #tpu.memory_space<vmem>>, vector<128x128xbf16>,
    } else {
    }
    return
  }
  func.func @transform_0(%arg0: i32, %arg1: i32, %arg2: i32) -> (i32, i32) {
    %c0_i32 = arith.constant 0 : i32
    return %arg0, %arg2 : i32, i32
  }
  func.func @transform_1(%arg0: i32, %arg1: i32, %arg2: i32) -> (i32, i32) {
    %c0_i32 = arith.constant 0 : i32
    return %arg2, %arg1 : i32, i32
  }
  func.func @transform_2(%arg0: i32, %arg1: i32, %arg2: i32) -> (i32, i32) {
    %c0_i32 = arith.constant 0 : i32
    %c0_i32_0 = arith.constant 0 : i32
    return %c0_i32, %arg1 : i32, i32
  }
  func.func @transform_3(%arg0: i32, %arg1: i32, %arg2: i32) -> (i32, i32) {
    %c0_i32 = arith.constant 0 : i32
    return %arg0, %arg1 : i32, i32
  }
}

module attributes {stable_mosaic.version = 11 : i64} {
  func.func @_conv3x3_residual_kernel(%arg0: i32, %arg1: memref<1x3x10x8x128xbf16, #tpu.memory_space<vmem>>, %arg2: memref<9x128x128xbf16, #tpu.memory_space<vmem>>, %arg3: memref<1x128xf32, #tpu.memory_space<vmem>>, %arg4: memref<1x8x8x128xbf16, #tpu.memory_space<vmem>>, %arg5: memref<1x8x8x128xbf16, #tpu.memory_space<vmem>>, %arg6: memref<64x128xf32, #tpu.memory_space<vmem>>) attributes {dimension_semantics = [#tpu.dimension_semantics<parallel>], iteration_bounds = array<i64: 2>, scalar_prefetch = 0 : i64, scratch_operands = 1 : i64, tpu.core_type = #tpu.core_type<tc>, window_params = [{transform_indices = @transform_0, window_bounds = array<i64: 1, 3, 10, 8, 128>}, {pipeline_mode = #tpu.pipeline_mode<synchronous>, transform_indices = @transform_1, window_bounds = array<i64: 9, 128, 128>}, {pipeline_mode = #tpu.pipeline_mode<synchronous>, transform_indices = @transform_2, window_bounds = array<i64: 1, 128>}, {transform_indices = @transform_3, window_bounds = array<i64: 1, 8, 8, 128>}, {transform_indices = @transform_4, window_bounds = array<i64: 1, 8, 8, 128>}]} {
    %cst = arith.constant 0.000000e+00 : f32
    %0 = vector.broadcast %cst : f32 to vector<64x128xf32>
    %c0 = arith.constant 0 : index
    %c0_0 = arith.constant 0 : index
    %1 = vector.load %arg6[%c0, %c0_0] : memref<64x128xf32, #tpu.memory_space<vmem>>, vector<64x128xf32>
    tpu.vector_store %arg6[%c0, %c0_0], %0 {strides = array<i32>} : memref<64x128xf32, #tpu.memory_space<vmem>>, vector<64x128xf32>,
    %c0_1 = arith.constant 0 : index
    %c0_2 = arith.constant 0 : index
    %c0_3 = arith.constant 0 : index
    %c0_4 = arith.constant 0 : index
    %c0_5 = arith.constant 0 : index
    %2 = vector.load %arg1[%c0_1, %c0_2, %c0_3, %c0_4, %c0_5] : memref<1x3x10x8x128xbf16, #tpu.memory_space<vmem>>, vector<1x1x10x8x128xbf16>
    %3 = vector.shape_cast %2 : vector<1x1x10x8x128xbf16> to vector<10x8x128xbf16>
    %4 = vector.extract_strided_slice %3 {offsets = [0, 0, 0], sizes = [8, 8, 128], strides = [1, 1, 1]} : vector<10x8x128xbf16> to vector<8x8x128xbf16>
    %5 = vector.shape_cast %4 : vector<8x8x128xbf16> to vector<64x128xbf16>
    %c0_6 = arith.constant 0 : index
    %c0_7 = arith.constant 0 : index
    %6 = vector.load %arg6[%c0_6, %c0_7] : memref<64x128xf32, #tpu.memory_space<vmem>>, vector<64x128xf32>
    %c0_8 = arith.constant 0 : index
    %c0_9 = arith.constant 0 : index
    %c0_10 = arith.constant 0 : index
    %7 = vector.load %arg2[%c0_8, %c0_9, %c0_10] : memref<9x128x128xbf16, #tpu.memory_space<vmem>>, vector<1x128x128xbf16>
    %8 = vector.shape_cast %7 : vector<1x128x128xbf16> to vector<128x128xbf16>
    %cst_11 = arith.constant dense<0.000000e+00> : vector<64x128xf32>
    %9 = tpu.matmul %5, %8, %cst_11 {dimension_numbers = #tpu.dot_dimension_numbers<[1], [0], [0], [1], [0, 0, 1, 1], [], []>} : vector<64x128xbf16>, vector<128x128xbf16>, vector<64x128xf32> -> vector<64x128xf32>
    %10 = arith.addf %6, %9 : vector<64x128xf32>
    %c0_12 = arith.constant 0 : index
    %c0_13 = arith.constant 0 : index
    %11 = vector.load %arg6[%c0_12, %c0_13] : memref<64x128xf32, #tpu.memory_space<vmem>>, vector<64x128xf32>
    tpu.vector_store %arg6[%c0_12, %c0_13], %10 {strides = array<i32>} : memref<64x128xf32, #tpu.memory_space<vmem>>, vector<64x128xf32>,
    %12 = vector.extract_strided_slice %3 {offsets = [1, 0, 0], sizes = [8, 8, 128], strides = [1, 1, 1]} : vector<10x8x128xbf16> to vector<8x8x128xbf16>
    %13 = vector.shape_cast %12 : vector<8x8x128xbf16> to vector<64x128xbf16>
    %c0_14 = arith.constant 0 : index
    %c0_15 = arith.constant 0 : index
    %14 = vector.load %arg6[%c0_14, %c0_15] : memref<64x128xf32, #tpu.memory_space<vmem>>, vector<64x128xf32>
    %c3 = arith.constant 3 : index
    %c0_16 = arith.constant 0 : index
    %c0_17 = arith.constant 0 : index
    %15 = vector.load %arg2[%c3, %c0_16, %c0_17] : memref<9x128x128xbf16, #tpu.memory_space<vmem>>, vector<1x128x128xbf16>
    %16 = vector.shape_cast %15 : vector<1x128x128xbf16> to vector<128x128xbf16>
    %cst_18 = arith.constant dense<0.000000e+00> : vector<64x128xf32>
    %17 = tpu.matmul %13, %16, %cst_18 {dimension_numbers = #tpu.dot_dimension_numbers<[1], [0], [0], [1], [0, 0, 1, 1], [], []>} : vector<64x128xbf16>, vector<128x128xbf16>, vector<64x128xf32> -> vector<64x128xf32>
    %18 = arith.addf %14, %17 : vector<64x128xf32>
    %c0_19 = arith.constant 0 : index
    %c0_20 = arith.constant 0 : index
    %19 = vector.load %arg6[%c0_19, %c0_20] : memref<64x128xf32, #tpu.memory_space<vmem>>, vector<64x128xf32>
    tpu.vector_store %arg6[%c0_19, %c0_20], %18 {strides = array<i32>} : memref<64x128xf32, #tpu.memory_space<vmem>>, vector<64x128xf32>,
    %20 = vector.extract_strided_slice %3 {offsets = [2, 0, 0], sizes = [8, 8, 128], strides = [1, 1, 1]} : vector<10x8x128xbf16> to vector<8x8x128xbf16>
    %21 = vector.shape_cast %20 : vector<8x8x128xbf16> to vector<64x128xbf16>
    %c0_21 = arith.constant 0 : index
    %c0_22 = arith.constant 0 : index
    %22 = vector.load %arg6[%c0_21, %c0_22] : memref<64x128xf32, #tpu.memory_space<vmem>>, vector<64x128xf32>
    %c6 = arith.constant 6 : index
    %c0_23 = arith.constant 0 : index
    %c0_24 = arith.constant 0 : index
    %23 = vector.load %arg2[%c6, %c0_23, %c0_24] : memref<9x128x128xbf16, #tpu.memory_space<vmem>>, vector<1x128x128xbf16>
    %24 = vector.shape_cast %23 : vector<1x128x128xbf16> to vector<128x128xbf16>
    %cst_25 = arith.constant dense<0.000000e+00> : vector<64x128xf32>
    %25 = tpu.matmul %21, %24, %cst_25 {dimension_numbers = #tpu.dot_dimension_numbers<[1], [0], [0], [1], [0, 0, 1, 1], [], []>} : vector<64x128xbf16>, vector<128x128xbf16>, vector<64x128xf32> -> vector<64x128xf32>
    %26 = arith.addf %22, %25 : vector<64x128xf32>
    %c0_26 = arith.constant 0 : index
    %c0_27 = arith.constant 0 : index
    %27 = vector.load %arg6[%c0_26, %c0_27] : memref<64x128xf32, #tpu.memory_space<vmem>>, vector<64x128xf32>
    tpu.vector_store %arg6[%c0_26, %c0_27], %26 {strides = array<i32>} : memref<64x128xf32, #tpu.memory_space<vmem>>, vector<64x128xf32>,
    %c0_28 = arith.constant 0 : index
    %c1 = arith.constant 1 : index
    %c0_29 = arith.constant 0 : index
    %c0_30 = arith.constant 0 : index
    %c0_31 = arith.constant 0 : index
    %28 = vector.load %arg1[%c0_28, %c1, %c0_29, %c0_30, %c0_31] : memref<1x3x10x8x128xbf16, #tpu.memory_space<vmem>>, vector<1x1x10x8x128xbf16>
    %29 = vector.shape_cast %28 : vector<1x1x10x8x128xbf16> to vector<10x8x128xbf16>
    %30 = vector.extract_strided_slice %29 {offsets = [0, 0, 0], sizes = [8, 8, 128], strides = [1, 1, 1]} : vector<10x8x128xbf16> to vector<8x8x128xbf16>
    %31 = vector.shape_cast %30 : vector<8x8x128xbf16> to vector<64x128xbf16>
    %c0_32 = arith.constant 0 : index
    %c0_33 = arith.constant 0 : index
    %32 = vector.load %arg6[%c0_32, %c0_33] : memref<64x128xf32, #tpu.memory_space<vmem>>, vector<64x128xf32>
    %c1_34 = arith.constant 1 : index
    %c0_35 = arith.constant 0 : index
    %c0_36 = arith.constant 0 : index
    %33 = vector.load %arg2[%c1_34, %c0_35, %c0_36] : memref<9x128x128xbf16, #tpu.memory_space<vmem>>, vector<1x128x128xbf16>
    %34 = vector.shape_cast %33 : vector<1x128x128xbf16> to vector<128x128xbf16>
    %cst_37 = arith.constant dense<0.000000e+00> : vector<64x128xf32>
    %35 = tpu.matmul %31, %34, %cst_37 {dimension_numbers = #tpu.dot_dimension_numbers<[1], [0], [0], [1], [0, 0, 1, 1], [], []>} : vector<64x128xbf16>, vector<128x128xbf16>, vector<64x128xf32> -> vector<64x128xf32>
    %36 = arith.addf %32, %35 : vector<64x128xf32>
    %c0_38 = arith.constant 0 : index
    %c0_39 = arith.constant 0 : index
    %37 = vector.load %arg6[%c0_38, %c0_39] : memref<64x128xf32, #tpu.memory_space<vmem>>, vector<64x128xf32>
    tpu.vector_store %arg6[%c0_38, %c0_39], %36 {strides = array<i32>} : memref<64x128xf32, #tpu.memory_space<vmem>>, vector<64x128xf32>,
    %38 = vector.extract_strided_slice %29 {offsets = [1, 0, 0], sizes = [8, 8, 128], strides = [1, 1, 1]} : vector<10x8x128xbf16> to vector<8x8x128xbf16>
    %39 = vector.shape_cast %38 : vector<8x8x128xbf16> to vector<64x128xbf16>
    %c0_40 = arith.constant 0 : index
    %c0_41 = arith.constant 0 : index
    %40 = vector.load %arg6[%c0_40, %c0_41] : memref<64x128xf32, #tpu.memory_space<vmem>>, vector<64x128xf32>
    %c4 = arith.constant 4 : index
    %c0_42 = arith.constant 0 : index
    %c0_43 = arith.constant 0 : index
    %41 = vector.load %arg2[%c4, %c0_42, %c0_43] : memref<9x128x128xbf16, #tpu.memory_space<vmem>>, vector<1x128x128xbf16>
    %42 = vector.shape_cast %41 : vector<1x128x128xbf16> to vector<128x128xbf16>
    %cst_44 = arith.constant dense<0.000000e+00> : vector<64x128xf32>
    %43 = tpu.matmul %39, %42, %cst_44 {dimension_numbers = #tpu.dot_dimension_numbers<[1], [0], [0], [1], [0, 0, 1, 1], [], []>} : vector<64x128xbf16>, vector<128x128xbf16>, vector<64x128xf32> -> vector<64x128xf32>
    %44 = arith.addf %40, %43 : vector<64x128xf32>
    %c0_45 = arith.constant 0 : index
    %c0_46 = arith.constant 0 : index
    %45 = vector.load %arg6[%c0_45, %c0_46] : memref<64x128xf32, #tpu.memory_space<vmem>>, vector<64x128xf32>
    tpu.vector_store %arg6[%c0_45, %c0_46], %44 {strides = array<i32>} : memref<64x128xf32, #tpu.memory_space<vmem>>, vector<64x128xf32>,
    %46 = vector.extract_strided_slice %29 {offsets = [2, 0, 0], sizes = [8, 8, 128], strides = [1, 1, 1]} : vector<10x8x128xbf16> to vector<8x8x128xbf16>
    %47 = vector.shape_cast %46 : vector<8x8x128xbf16> to vector<64x128xbf16>
    %c0_47 = arith.constant 0 : index
    %c0_48 = arith.constant 0 : index
    %48 = vector.load %arg6[%c0_47, %c0_48] : memref<64x128xf32, #tpu.memory_space<vmem>>, vector<64x128xf32>
    %c7 = arith.constant 7 : index
    %c0_49 = arith.constant 0 : index
    %c0_50 = arith.constant 0 : index
    %49 = vector.load %arg2[%c7, %c0_49, %c0_50] : memref<9x128x128xbf16, #tpu.memory_space<vmem>>, vector<1x128x128xbf16>
    %50 = vector.shape_cast %49 : vector<1x128x128xbf16> to vector<128x128xbf16>
    %cst_51 = arith.constant dense<0.000000e+00> : vector<64x128xf32>
    %51 = tpu.matmul %47, %50, %cst_51 {dimension_numbers = #tpu.dot_dimension_numbers<[1], [0], [0], [1], [0, 0, 1, 1], [], []>} : vector<64x128xbf16>, vector<128x128xbf16>, vector<64x128xf32> -> vector<64x128xf32>
    %52 = arith.addf %48, %51 : vector<64x128xf32>
    %c0_52 = arith.constant 0 : index
    %c0_53 = arith.constant 0 : index
    %53 = vector.load %arg6[%c0_52, %c0_53] : memref<64x128xf32, #tpu.memory_space<vmem>>, vector<64x128xf32>
    tpu.vector_store %arg6[%c0_52, %c0_53], %52 {strides = array<i32>} : memref<64x128xf32, #tpu.memory_space<vmem>>, vector<64x128xf32>,
    %c0_54 = arith.constant 0 : index
    %c2 = arith.constant 2 : index
    %c0_55 = arith.constant 0 : index
    %c0_56 = arith.constant 0 : index
    %c0_57 = arith.constant 0 : index
    %54 = vector.load %arg1[%c0_54, %c2, %c0_55, %c0_56, %c0_57] : memref<1x3x10x8x128xbf16, #tpu.memory_space<vmem>>, vector<1x1x10x8x128xbf16>
    %55 = vector.shape_cast %54 : vector<1x1x10x8x128xbf16> to vector<10x8x128xbf16>
    %56 = vector.extract_strided_slice %55 {offsets = [0, 0, 0], sizes = [8, 8, 128], strides = [1, 1, 1]} : vector<10x8x128xbf16> to vector<8x8x128xbf16>
    %57 = vector.shape_cast %56 : vector<8x8x128xbf16> to vector<64x128xbf16>
    %c0_58 = arith.constant 0 : index
    %c0_59 = arith.constant 0 : index
    %58 = vector.load %arg6[%c0_58, %c0_59] : memref<64x128xf32, #tpu.memory_space<vmem>>, vector<64x128xf32>
    %c2_60 = arith.constant 2 : index
    %c0_61 = arith.constant 0 : index
    %c0_62 = arith.constant 0 : index
    %59 = vector.load %arg2[%c2_60, %c0_61, %c0_62] : memref<9x128x128xbf16, #tpu.memory_space<vmem>>, vector<1x128x128xbf16>
    %60 = vector.shape_cast %59 : vector<1x128x128xbf16> to vector<128x128xbf16>
    %cst_63 = arith.constant dense<0.000000e+00> : vector<64x128xf32>
    %61 = tpu.matmul %57, %60, %cst_63 {dimension_numbers = #tpu.dot_dimension_numbers<[1], [0], [0], [1], [0, 0, 1, 1], [], []>} : vector<64x128xbf16>, vector<128x128xbf16>, vector<64x128xf32> -> vector<64x128xf32>
    %62 = arith.addf %58, %61 : vector<64x128xf32>
    %c0_64 = arith.constant 0 : index
    %c0_65 = arith.constant 0 : index
    %63 = vector.load %arg6[%c0_64, %c0_65] : memref<64x128xf32, #tpu.memory_space<vmem>>, vector<64x128xf32>
    tpu.vector_store %arg6[%c0_64, %c0_65], %62 {strides = array<i32>} : memref<64x128xf32, #tpu.memory_space<vmem>>, vector<64x128xf32>,
    %64 = vector.extract_strided_slice %55 {offsets = [1, 0, 0], sizes = [8, 8, 128], strides = [1, 1, 1]} : vector<10x8x128xbf16> to vector<8x8x128xbf16>
    %65 = vector.shape_cast %64 : vector<8x8x128xbf16> to vector<64x128xbf16>
    %c0_66 = arith.constant 0 : index
    %c0_67 = arith.constant 0 : index
    %66 = vector.load %arg6[%c0_66, %c0_67] : memref<64x128xf32, #tpu.memory_space<vmem>>, vector<64x128xf32>
    %c5 = arith.constant 5 : index
    %c0_68 = arith.constant 0 : index
    %c0_69 = arith.constant 0 : index
    %67 = vector.load %arg2[%c5, %c0_68, %c0_69] : memref<9x128x128xbf16, #tpu.memory_space<vmem>>, vector<1x128x128xbf16>
    %68 = vector.shape_cast %67 : vector<1x128x128xbf16> to vector<128x128xbf16>
    %cst_70 = arith.constant dense<0.000000e+00> : vector<64x128xf32>
    %69 = tpu.matmul %65, %68, %cst_70 {dimension_numbers = #tpu.dot_dimension_numbers<[1], [0], [0], [1], [0, 0, 1, 1], [], []>} : vector<64x128xbf16>, vector<128x128xbf16>, vector<64x128xf32> -> vector<64x128xf32>
    %70 = arith.addf %66, %69 : vector<64x128xf32>
    %c0_71 = arith.constant 0 : index
    %c0_72 = arith.constant 0 : index
    %71 = vector.load %arg6[%c0_71, %c0_72] : memref<64x128xf32, #tpu.memory_space<vmem>>, vector<64x128xf32>
    tpu.vector_store %arg6[%c0_71, %c0_72], %70 {strides = array<i32>} : memref<64x128xf32, #tpu.memory_space<vmem>>, vector<64x128xf32>,
    %72 = vector.extract_strided_slice %55 {offsets = [2, 0, 0], sizes = [8, 8, 128], strides = [1, 1, 1]} : vector<10x8x128xbf16> to vector<8x8x128xbf16>
    %73 = vector.shape_cast %72 : vector<8x8x128xbf16> to vector<64x128xbf16>
    %c0_73 = arith.constant 0 : index
    %c0_74 = arith.constant 0 : index
    %74 = vector.load %arg6[%c0_73, %c0_74] : memref<64x128xf32, #tpu.memory_space<vmem>>, vector<64x128xf32>
    %c8 = arith.constant 8 : index
    %c0_75 = arith.constant 0 : index
    %c0_76 = arith.constant 0 : index
    %75 = vector.load %arg2[%c8, %c0_75, %c0_76] : memref<9x128x128xbf16, #tpu.memory_space<vmem>>, vector<1x128x128xbf16>
    %76 = vector.shape_cast %75 : vector<1x128x128xbf16> to vector<128x128xbf16>
    %cst_77 = arith.constant dense<0.000000e+00> : vector<64x128xf32>
    %77 = tpu.matmul %73, %76, %cst_77 {dimension_numbers = #tpu.dot_dimension_numbers<[1], [0], [0], [1], [0, 0, 1, 1], [], []>} : vector<64x128xbf16>, vector<128x128xbf16>, vector<64x128xf32> -> vector<64x128xf32>
    %78 = arith.addf %74, %77 : vector<64x128xf32>
    %c0_78 = arith.constant 0 : index
    %c0_79 = arith.constant 0 : index
    %79 = vector.load %arg6[%c0_78, %c0_79] : memref<64x128xf32, #tpu.memory_space<vmem>>, vector<64x128xf32>
    tpu.vector_store %arg6[%c0_78, %c0_79], %78 {strides = array<i32>} : memref<64x128xf32, #tpu.memory_space<vmem>>, vector<64x128xf32>,
    %c0_80 = arith.constant 0 : index
    %c0_81 = arith.constant 0 : index
    %80 = vector.load %arg6[%c0_80, %c0_81] : memref<64x128xf32, #tpu.memory_space<vmem>>, vector<64x128xf32>
    %c0_82 = arith.constant 0 : index
    %c0_83 = arith.constant 0 : index
    %81 = vector.load %arg3[%c0_82, %c0_83] : memref<1x128xf32, #tpu.memory_space<vmem>>, vector<1x128xf32>
    %82 = vector.broadcast %81 : vector<1x128xf32> to vector<64x128xf32>
    %83 = arith.addf %80, %82 : vector<64x128xf32>
    %cst_84 = arith.constant 0.000000e+00 : f32
    %84 = vector.broadcast %cst_84 : f32 to vector<64x128xf32>
    %85 = arith.cmpf ogt, %83, %84 : vector<64x128xf32>
    %cst_85 = arith.constant 1.000000e-01 : f32
    %86 = vector.broadcast %cst_85 : f32 to vector<64x128xf32>
    %87 = arith.mulf %86, %83 : vector<64x128xf32>
    %88 = arith.select %85, %83, %87 : vector<64x128xi1>, vector<64x128xf32>
    %89 = vector.shape_cast %88 : vector<64x128xf32> to vector<8x8x128xf32>
    %c0_86 = arith.constant 0 : index
    %c0_87 = arith.constant 0 : index
    %c0_88 = arith.constant 0 : index
    %c0_89 = arith.constant 0 : index
    %90 = vector.load %arg4[%c0_86, %c0_87, %c0_88, %c0_89] : memref<1x8x8x128xbf16, #tpu.memory_space<vmem>>, vector<1x8x8x128xbf16>
    %91 = vector.shape_cast %90 : vector<1x8x8x128xbf16> to vector<8x8x128xbf16>
    %92 = arith.extf %91 : vector<8x8x128xbf16> to vector<8x8x128xf32>
    %93 = arith.addf %89, %92 : vector<8x8x128xf32>
    %94 = arith.truncf %93 : vector<8x8x128xf32> to vector<8x8x128xbf16>
    %c0_90 = arith.constant 0 : index
    %c0_91 = arith.constant 0 : index
    %c0_92 = arith.constant 0 : index
    %c0_93 = arith.constant 0 : index
    %95 = vector.load %arg5[%c0_90, %c0_91, %c0_92, %c0_93] : memref<1x8x8x128xbf16, #tpu.memory_space<vmem>>, vector<1x8x8x128xbf16>
    %96 = vector.shape_cast %95 : vector<1x8x8x128xbf16> to vector<8x8x128xbf16>
    %97 = vector.shape_cast %94 : vector<8x8x128xbf16> to vector<1x8x8x128xbf16>
    tpu.vector_store %arg5[%c0_90, %c0_91, %c0_92, %c0_93], %97 {strides = array<i32>} : memref<1x8x8x128xbf16, #tpu.memory_space<vmem>>, vector<1x8x8x128xbf16>,
    return
  }
  func.func @transform_0(%arg0: i32) -> (i32, i32, i32, i32, i32) {
    %c0_i32 = arith.constant 0 : i32
    %c0_i32_0 = arith.constant 0 : i32
    %c0_i32_1 = arith.constant 0 : i32
    %c0_i32_2 = arith.constant 0 : i32
    %c0_i32_3 = arith.constant 0 : i32
    return %arg0, %c0_i32, %c0_i32_0, %c0_i32_1, %c0_i32_2 : i32, i32, i32, i32, i32
  }
  func.func @transform_1(%arg0: i32) -> (i32, i32, i32) {
    %c0_i32 = arith.constant 0 : i32
    %c0_i32_0 = arith.constant 0 : i32
    %c0_i32_1 = arith.constant 0 : i32
    %c0_i32_2 = arith.constant 0 : i32
    return %c0_i32, %c0_i32_0, %c0_i32_1 : i32, i32, i32
  }
  func.func @transform_2(%arg0: i32) -> (i32, i32) {
    %c0_i32 = arith.constant 0 : i32
    %c0_i32_0 = arith.constant 0 : i32
    %c0_i32_1 = arith.constant 0 : i32
    return %c0_i32, %c0_i32_0 : i32, i32
  }
  func.func @transform_3(%arg0: i32) -> (i32, i32, i32, i32) {
    %c0_i32 = arith.constant 0 : i32
    %c0_i32_0 = arith.constant 0 : i32
    %c0_i32_1 = arith.constant 0 : i32
    %c0_i32_2 = arith.constant 0 : i32
    return %arg0, %c0_i32, %c0_i32_0, %c0_i32_1 : i32, i32, i32, i32
  }
  func.func @transform_4(%arg0: i32) -> (i32, i32, i32, i32) {
    %c0_i32 = arith.constant 0 : i32
    %c0_i32_0 = arith.constant 0 : i32
    %c0_i32_1 = arith.constant 0 : i32
    %c0_i32_2 = arith.constant 0 : i32
    return %arg0, %c0_i32, %c0_i32_0, %c0_i32_1 : i32, i32, i32, i32
  }
}

</mosaic_0001>

<bundles_post_ra>
// kernel: residual_block_forward.5
= control target key start
LH: loop header
LB: loop body
LE: loop exit
PB: predicated region body
PF: predicated region fallthrough
CT: control target
= control target key end

     0   :  { %s777_s1 = inlined_call_operand.vmem [shape: bf16[128,128], index: 1, kind: input, shape index: {}]   ;;  %s778_s0 = inlined_call_operand.vmem [shape: bf16[128,128], index: 0, kind: input, shape index: {}]   ;;  %s779_s2 = inlined_call_operand.vmem [shape: f32[1,128], index: 2, kind: input, shape index: {}]   ;;  %s780_s3 = inlined_call_operand.vmem [shape: bf16[128,128], index: 3, kind: output, shape index: {}]  }
   0x1   :  { %v642_v0 = vld [vmem:[%s777_s1 + $0x38] sm:$0xff]   ;;  %v643_v1 = vld [vmem:[%s777_s1 + $0x30] sm:$0xff]   ;;  %v644_v2 = vld [vmem:[%s777_s1 + $0x28] sm:$0xff]  }
   0x2   :  { %594 = vmatprep.subr.bf16.mxu0 %v642_v0  ;;  %626 = vmatprep.subr.bf16.mxu1 %v642_v0  ;;  %v645_v3 = vld [vmem:[%s777_s1 + $0x20] sm:$0xff]   ;;  %v646_v6 = vld [vmem:[%s777_s1 + $0x18] sm:$0xff]   ;;  %v647_v7 = vld [vmem:[%s777_s1 + $0x10] sm:$0xff]  }
   0x3   :  { %595 = vmatpush3.bf16.msra.mxu0 %v642_v0  ;;  %634 = vmatpush3.bf16.msra.mxu1 %v642_v0  ;;  %v650_v4 = vld [vmem:[%s778_s0] sm:$0xff]   ;;  %v648_v8 = vld [vmem:[%s777_s1 + $0x8] sm:$0xff]   ;;  %v654_v12 = vld [vmem:[%s778_s0 + $0x10] sm:$0xff]  }
   0x4   :  { %596 = vmatprep.subr.bf16.mxu0 %v643_v1  ;;  %627 = vmatprep.subr.bf16.mxu1 %v643_v1  ;;  %v651_v5 = vld [vmem:[%s778_s0 + $0x20] sm:$0xff]   ;;  %v652_v10 = vld [vmem:[%s778_s0 + $0x8] sm:$0xff]   ;;  %v655_v13 = vld [vmem:[%s778_s0 + $0x30] sm:$0xff]  }
   0x5   :  { %610 = vmatprep.mubr.bf16.mxu0 %v650_v4  ;;  %618 = vmatprep.mubr.bf16.mxu1 %v651_v5  ;;  %v649_v9 = vld [vmem:[%s777_s1] sm:$0xff]   ;;  %v653_v11 = vld [vmem:[%s778_s0 + $0x28] sm:$0xff]   ;;  %v656_v14 = vld [vmem:[%s778_s0 + $0x18] sm:$0xff]  }
   0x6   :  { %v657_v15 = vld [vmem:[%s778_s0 + $0x38] sm:$0xff]   ;;  %v729_v16 = vld [vmem:[%s779_s2] ss:$0 sm:$0xff] }
   0x7   :  { %597 = vmatpush3.bf16.msra.mxu0 %v643_v1  ;;  %635 = vmatpush3.bf16.msra.mxu1 %v643_v1 }
   0x8   :  { %598 = vmatprep.subr.bf16.mxu0 %v644_v2  ;;  %628 = vmatprep.subr.bf16.mxu1 %v644_v2 }
   0xb   :  { %599 = vmatpush3.bf16.msra.mxu0 %v644_v2  ;;  %636 = vmatpush3.bf16.msra.mxu1 %v644_v2 }
   0xc   :  { %600 = vmatprep.subr.bf16.mxu0 %v645_v3  ;;  %629 = vmatprep.subr.bf16.mxu1 %v645_v3 }
   0xf   :  { %601 = vmatpush3.bf16.msra.mxu0 %v645_v3  ;;  %637 = vmatpush3.bf16.msra.mxu1 %v645_v3 }
  0x10   :  { %602 = vmatprep.subr.bf16.mxu0 %v646_v6  ;;  %630 = vmatprep.subr.bf16.mxu1 %v646_v6 }
  0x13   :  { %603 = vmatpush3.bf16.msra.mxu0 %v646_v6  ;;  %638 = vmatpush3.bf16.msra.mxu1 %v646_v6 }
  0x14   :  { %604 = vmatprep.subr.bf16.mxu0 %v647_v7  ;;  %631 = vmatprep.subr.bf16.mxu1 %v647_v7 }
  0x17   :  { %605 = vmatpush3.bf16.msra.mxu0 %v647_v7  ;;  %639 = vmatpush3.bf16.msra.mxu1 %v647_v7 }
  0x18   :  { %606 = vmatprep.subr.bf16.mxu0 %v648_v8  ;;  %632 = vmatprep.subr.bf16.mxu1 %v648_v8 }
  0x1b   :  { %607 = vmatpush3.bf16.msra.mxu0 %v648_v8  ;;  %640 = vmatpush3.bf16.msra.mxu1 %v648_v8 }
  0x1c   :  { %608 = vmatprep.subr.bf16.mxu0 %v649_v9  ;;  %633 = vmatprep.subr.bf16.mxu1 %v649_v9 }
  0x1f   :  { %609 = vmatpush3.bf16.msra.mxu0 %v649_v9  ;;  %641 = vmatpush3.bf16.msra.mxu1 %v649_v9 }
  0x22   :  { %611 = vmatmul.mubr.bf16.vlgmr.msra.gmra.mxu0 %v652_v10  ;;  %619 = vmatmul.mubr.bf16.vlgmr.msra.gmra.mxu1 %v653_v11 }
  0x23   :  { %614 = vmatprep.mubr.bf16.mxu0 %v654_v12  ;;  %622 = vmatprep.mubr.bf16.mxu1 %v655_v13 }
  0x2a   :  { %615 = vmatmul.mubr.bf16.gmra.mxu0 %v656_v14  ;;  %623 = vmatmul.mubr.bf16.gmra.mxu1 %v657_v15 }
  0xe2   :  { %v612_v17 = vpop.f32.mrf.mxu0  ;;  %v620_v18 = vpop.f32.mrf.mxu1 }
  0xe3   :  { %v336_v19 = vadd.f32 %v612_v17, %v729_v16  ;;  %v344_v20 = vadd.f32 %v620_v18, %v729_v16 }
  0xe4   :  { %v213_v21 = vpop.f32.mrf.mxu0  ;;  %v245_v22 = vpop.f32.mrf.mxu1 }
  0xe5   :  { %vm352_vm0 = vcmp.gt.f32.partialorder %v336_v19, 0.0  ;;  %v368_v23 = vmul.f32 0.1, %v336_v19  ;;  %vm360_vm1 = vcmp.gt.f32.partialorder %v344_v20, 0.0  ;;  %v376_v24 = vmul.f32 0.1, %v344_v20 }
  0xe6   :  { %v334_v25 = vadd.f32 %v729_v16, %v213_v21  ;;  %v342_v26 = vadd.f32 %v729_v16, %v245_v22  ;;  %v613_v27 = vpop.f32.mrf.mxu0  ;;  %v621_v28 = vpop.f32.mrf.mxu1 }
  0xe7   :  { %v337_v29 = vadd.f32 %v613_v27, %v729_v16  ;;  %v345_v30 = vadd.f32 %v621_v28, %v729_v16  ;;  %v384_v31 = vsel %vm352_vm0, %v336_v19, %v368_v23  ;;  %v392_v32 = vsel %vm360_vm1, %v344_v20, %v376_v24 }
  0xe8   :  { %vm350_vm2 = vcmp.gt.f32.partialorder %v334_v25, 0.0  ;;  %v366_v33 = vmul.f32 0.1, %v334_v25  ;;  %v216_v34 = vpop.f32.mrf.mxu0  ;;  %v248_v35 = vpop.f32.mrf.mxu1  ;;  %vm358_vm5 = vcmp.gt.f32.partialorder %v342_v26, 0.0  ;;  %v374_v38 = vmul.f32 0.1, %v342_v26 }
  0xe9   :  { %vm353_vm3 = vcmp.gt.f32.partialorder %v337_v29, 0.0  ;;  %v369_v36 = vmul.f32 0.1, %v337_v29  ;;  %vm361_vm4 = vcmp.gt.f32.partialorder %v345_v30, 0.0  ;;  %v377_v37 = vmul.f32 0.1, %v345_v30 }
  0xea   :  { %v335_v39 = vadd.f32 %v729_v16, %v216_v34  ;;  %v343_v40 = vadd.f32 %v729_v16, %v248_v35  ;;  %v616_v41 = vpop.f32.mrf.mxu0  ;;  %v624_v42 = vpop.f32.mrf.mxu1  ;;  %v382_v53 = vsel %vm350_vm2, %v334_v25, %v366_v33  ;;  %v390_v58 = vsel %vm358_vm5, %v342_v26, %v374_v38 }
  0xeb   :  { %v385_v43 = vsel %vm353_vm3, %v337_v29, %v369_v36  ;;  %v393_v44 = vsel %vm361_vm4, %v345_v30, %v377_v37  ;;  %v340_v45 = vadd.f32 %v616_v41, %v729_v16  ;;  %v348_v46 = vadd.f32 %v624_v42, %v729_v16 }
  0xec   :  { %v539_v47 = vpack.c.bf16 %v385_v43, %v384_v31  ;;  %v559_v48 = vpack.c.bf16 %v393_v44, %v392_v32  ;;  %vm351_vm6 = vcmp.gt.f32.partialorder %v335_v39, 0.0  ;;  %v367_v49 = vmul.f32 0.1, %v335_v39  ;;  %v229_v50 = vpop.f32.mrf.mxu0  ;;  %v261_v51 = vpop.f32.mrf.mxu1 }
  0xed   :  { %vm359_vm7 = vcmp.gt.f32.partialorder %v343_v40, 0.0  ;;  %v375_v52 = vmul.f32 0.1, %v343_v40  ;;  %v338_v55 = vadd.f32 %v729_v16, %v229_v50  ;;  %v346_v61 = vadd.f32 %v729_v16, %v261_v51 }
  0xee   :  { %571 = vst [vmem:[%s780_s3 + $0x8] sm:$0xff] %v539_v47   ;;  %575 = vst [vmem:[%s780_s3 + $0x28] sm:$0xff] %v559_v48   ;;  %v383_v54 = vsel %vm351_vm6, %v335_v39, %v367_v49  ;;  %v617_v56 = vpop.f32.mrf.mxu0  ;;  %v625_v57 = vpop.f32.mrf.mxu1  ;;  %vm356_vm8 = vcmp.gt.f32.partialorder %v340_v45, 0.0  ;;  %v372_v63 = vmul.f32 0.1, %v340_v45  ;;  %vm364_vm9 = vcmp.gt.f32.partialorder %v348_v46, 0.0 }
  0xef   :  { %v534_v59 = vpack.c.bf16 %v383_v54, %v382_v53  ;;  %v391_v60 = vsel %vm359_vm7, %v343_v40, %v375_v52  ;;  %v380_v2 = vmul.f32 0.1, %v348_v46  ;;  %vm354_vm10 = vcmp.gt.f32.partialorder %v338_v55, 0.0 }
  0xf0   :  { %v554_v62 = vpack.c.bf16 %v391_v60, %v390_v58  ;;  %v232_v0 = vpop.f32.mrf.mxu0  ;;  %v264_v1 = vpop.f32.mrf.mxu1  ;;  %v341_v3 = vadd.f32 %v617_v56, %v729_v16  ;;  %v349_v4 = vadd.f32 %v625_v57, %v729_v16  ;;  %v370_v5 = vmul.f32 0.1, %v338_v55 }
  0xf1   :  { %535 = vst [vmem:[%s780_s3] sm:$0xff] %v534_v59   ;;  %vm362_vm11 = vcmp.gt.f32.partialorder %v346_v61, 0.0  ;;  %v339_v6 = vadd.f32 %v729_v16, %v232_v0  ;;  %v347_v7 = vadd.f32 %v729_v16, %v264_v1  ;;  %v378_v8 = vmul.f32 0.1, %v346_v61 }
  0xf2   :  { %574 = vst [vmem:[%s780_s3 + $0x20] sm:$0xff] %v554_v62   ;;  %vm357_vm12 = vcmp.gt.f32.partialorder %v341_v3, 0.0  ;;  %v373_v9 = vmul.f32 0.1, %v341_v3  ;;  %vm365_vm13 = vcmp.gt.f32.partialorder %v349_v4, 0.0  ;;  %v388_v12 = vsel %vm356_vm8, %v340_v45, %v372_v63 }
  0xf3   :  { %v381_v10 = vmul.f32 0.1, %v349_v4  ;;  %vm355_vm14 = vcmp.gt.f32.partialorder %v339_v6, 0.0  ;;  %v371_v11 = vmul.f32 0.1, %v339_v6  ;;  %vm363_vm15 = vcmp.gt.f32.partialorder %v347_v7, 0.0 }
  0xf4   :  { %v396_v13 = vsel %vm364_vm9, %v348_v46, %v380_v2  ;;  %v389_v14 = vsel %vm357_vm12, %v341_v3, %v373_v9  ;;  %v379_v15 = vmul.f32 0.1, %v347_v7  ;;  %v386_v17 = vsel %vm354_vm10, %v338_v55, %v370_v5 }
  0xf5   :  { %v549_v18 = vpack.c.bf16 %v389_v14, %v388_v12  ;;  %v397_v19 = vsel %vm365_vm13, %v349_v4, %v381_v10  ;;  %v387_v20 = vsel %vm355_vm14, %v339_v6, %v371_v11  ;;  %v394_v16 = vsel %vm362_vm11, %v346_v61, %v378_v8 }
  0xf6   :  { %v569_v21 = vpack.c.bf16 %v397_v19, %v396_v13  ;;  %v544_v22 = vpack.c.bf16 %v387_v20, %v386_v17  ;;  %v395_v23 = vsel %vm363_vm15, %v347_v7, %v379_v15 }
  0xf7   :  { %573 = vst [vmem:[%s780_s3 + $0x18] sm:$0xff] %v549_v18   ;;  %v564_v24 = vpack.c.bf16 %v395_v23, %v394_v16 }
  0xf8   :  { %577 = vst [vmem:[%s780_s3 + $0x38] sm:$0xff] %v569_v21   ;;  %572 = vst [vmem:[%s780_s3 + $0x10] sm:$0xff] %v544_v22  }
  0xf9   :  { %576 = vst [vmem:[%s780_s3 + $0x30] sm:$0xff] %v564_v24  }

// kernel: residual_block_forward.7
= control target key start
LH: loop header
LB: loop body
LE: loop exit
PB: predicated region body
PF: predicated region fallthrough
CT: control target
= control target key end

     0   :  { %s2697_s15 = smov 0   ;;  %s3067_s0 = inlined_call_operand.vmem [shape: bf16[2,3,10,8,128], index: 0, kind: input, shape index: {}]   ;;  %s3068_s1 = inlined_call_operand.vmem [shape: bf16[9,128,128], index: 1, kind: input, shape index: {}]   ;;  %s3069_s2 = inlined_call_operand.vmem [shape: f32[1,128], index: 2, kind: input, shape index: {}]   ;;  %s3070_s3 = inlined_call_operand.vmem [shape: bf16[2,8,8,128], index: 3, kind: input, shape index: {}]   ;;  %s3071_s4 = inlined_call_operand.vmem [shape: bf16[2,8,8,128], index: 4, kind: output, shape index: {}]  }
   0x1 LB: > { %s1912_s16 = sadd.s32 4294967295, %s2670_s15   ;;  %p1916_p0 = scmp.ge.s32.totalorder %s2670_s15, 1  ;;  %s2670_s15 = sphi %s2697_s15, %s14_s15  }
   0x2   : > { %p172_p1 = scmp.lt.s32.totalorder %s2670_s15, 3 }
   0x4   : > { %p173_p2 = pnand %p1916_p0, %p172_p1 }
   0x6   : > { %176 = sbr.rel (%p173_p2) target bundleno = 386 (0x182), region = 36 }
   0xb   : > { %v2565_v0 = vld [vmem:[%s3068_s1 + $0x38] sm:$0xff]   ;;  %p203_p3 = scmp.lt.s32.totalorder %s1912_s16, 1  ;;  %v2567_v2 = vld [vmem:[%s3068_s1 + $0x30] sm:$0xff]   ;;  %v2569_v4 = vld [vmem:[%s3068_s1 + $0x28] sm:$0xff]  }
   0xc   : > { %v2566_v1 = vld [vmem:[%s3068_s1 + $0xf8] sm:$0xff]   ;;  %2324 = vmatprep.subr.bf16.mxu0 %v2565_v0  ;;  %v2568_v3 = vld [vmem:[%s3068_s1 + $0xf0] sm:$0xff]   ;;  %v2570_v5 = vld [vmem:[%s3068_s1 + $0xe8] sm:$0xff]  }
   0xd   : > { %2348 = vmatprep.subr.bf16.mxu1 %v2566_v1  ;;  %2325 = vmatpush3.bf16.msra.mxu0 %v2565_v0  ;;  %s3085_s16 = smov (!%p203_p3, %s1912_s16), 1  ;;  %v2571_v6 = vld [vmem:[%s3068_s1 + $0x20] sm:$0xff]   ;;  %v2573_v8 = vld [vmem:[%s3068_s1 + $0x18] sm:$0xff]   ;;  %v2575_v10 = vld [vmem:[%s3068_s1 + $0x10] sm:$0xff]  }
   0xe   : > { %2349 = vmatpush3.bf16.msra.mxu1 %v2566_v1  ;;  %2326 = vmatprep.subr.bf16.mxu0 %v2567_v2  ;;  %v2572_v7 = vld [vmem:[%s3068_s1 + $0xe0] sm:$0xff]   ;;  %s2556_s7 = smul.u32 120, %s3085_s16  ;;  %v2574_v9 = vld [vmem:[%s3068_s1 + $0xd8] sm:$0xff]   ;;  %v2576_v14 = vld [vmem:[%s3068_s1 + $0xd0] sm:$0xff]  }
   0xf   : > { %2350 = vmatprep.subr.bf16.mxu1 %v2568_v3  ;;  %v2577_v17 = vld [vmem:[%s3068_s1 + $0x8] sm:$0xff]   ;;  %v2579_v19 = vld [vmem:[%s3068_s1] sm:$0xff]   ;;  %v2585_v23 = vld [vmem:[%s3068_s1 + $0x1b8] sm:$0xff]  }
  0x10   : > { %s2741_s14 = scalar_lea.vmem %s3067_s0, %s2556_s7  ;;  %v2578_v18 = vld [vmem:[%s3068_s1 + $0xc8] sm:$0xff]   ;;  %v2580_v20 = vld [vmem:[%s3068_s1 + $0xc0] sm:$0xff]   ;;  %v2586_v24 = vld [vmem:[%s3068_s1 + $0x78] sm:$0xff]  }
  0x11   : > { %2327 = vmatpush3.bf16.msra.mxu0 %v2567_v2  ;;  %v227_v11 = vld [vmem:[%s2741_s14] sm:$0xf]  ;;  %v228_v12 = vld [vmem:[%s2741_s14 + $0x4] sm:$0xf]  ;;  %v229_v13 = vld [vmem:[%s2741_s14 + $0x8] sm:$0xf] }
  0x12   : > { %2351 = vmatpush3.bf16.msra.mxu1 %v2568_v3  ;;  %2328 = vmatprep.subr.bf16.mxu0 %v2569_v4  ;;  %v1922_v15 = vcombine.low %v227_v11, %v228_v12  ;;  %v1950_v16 = vcombine.low %v228_v12, %v229_v13  ;;  %v230_v21 = vld [vmem:[%s2741_s14 + $0xc] sm:$0xf]  ;;  %v231_v22 = vld [vmem:[%s2741_s14 + $0x10] sm:$0xf]  ;;  %v232_v26 = vld [vmem:[%s2741_s14 + $0x14] sm:$0xf] }
  0x13   : > { %2352 = vmatprep.subr.bf16.mxu1 %v2570_v5  ;;  %v1923_v25 = vcombine.low %v229_v13, %v230_v21  ;;  %v1951_v27 = vcombine.low %v230_v21, %v231_v22  ;;  %v233_v28 = vld [vmem:[%s2741_s14 + $0x18] sm:$0xf]  ;;  %v2587_v29 = vld [vmem:[%s3068_s1 + $0x1b0] sm:$0xff]   ;;  %v2780_v31 = vcombine.low %v231_v22, %v232_v26  ;;  %v2589_v33 = vld [vmem:[%s3068_s1 + $0x1a8] sm:$0xff]  }
  0x14   : > { %2340 = vmatprep.mubr.bf16.mxu0 %v1922_v15  ;;  %2364 = vmatprep.mubr.bf16.mxu1 %v1950_v16  ;;  %v2588_v30 = vld [vmem:[%s3068_s1 + $0x70] sm:$0xff]   ;;  %v1952_v32 = vcombine.low %v232_v26, %v233_v28  ;;  %v234_v34 = vld [vmem:[%s2741_s14 + $0x1c] sm:$0xf]  ;;  %v2787_v35 = vld [vmem:[%s2741_s14 + $0x20] sm:$0xf] }
  0x15   : > { %2329 = vmatpush3.bf16.msra.mxu0 %v2569_v4  ;;  %v2590_v36 = vld [vmem:[%s3068_s1 + $0x68] sm:$0xff]   ;;  %v2793_v37 = vcombine.low %v233_v28, %v234_v34  ;;  %v1953_v39 = vcombine.low %v234_v34, %v2787_v35  ;;  %v2591_v41 = vld [vmem:[%s3068_s1 + $0x1a0] sm:$0xff]   ;;  %v2593_v44 = vld [vmem:[%s3068_s1 + $0x198] sm:$0xff]  }
  0x16   : > { %2353 = vmatpush3.bf16.msra.mxu1 %v2570_v5  ;;  %2330 = vmatprep.subr.bf16.mxu0 %v2571_v6  ;;  %v1987_v38 = vld [vmem:[%s2741_s14 + $0x28] sm:$0xf]  ;;  %v2798_v40 = vld [vmem:[%s2741_s14 + $0x2c] sm:$0xf]  ;;  %v2592_v42 = vld [vmem:[%s3068_s1 + $0x60] sm:$0xff]  }
  0x17   : > { %2354 = vmatprep.subr.bf16.mxu1 %v2572_v7  ;;  %v2013_v43 = vcombine.low %v1987_v38, %v2798_v40  ;;  %v2594_v45 = vld [vmem:[%s3068_s1 + $0x58] sm:$0xff]   ;;  %v2599_v46 = vld [vmem:[%s3068_s1 + $0x190] sm:$0xff]   ;;  %v2601_v48 = vld [vmem:[%s3068_s1 + $0x188] sm:$0xff]  }
  0x18   : > { %v2600_v47 = vld [vmem:[%s3068_s1 + $0x50] sm:$0xff]   ;;  %v2602_v49 = vld [vmem:[%s3068_s1 + $0x48] sm:$0xff]   ;;  %v2603_v50 = vld [vmem:[%s3068_s1 + $0x180] sm:$0xff]  }
  0x19   : > { %2331 = vmatpush3.bf16.msra.mxu0 %v2571_v6  ;;  %v2604_v51 = vld [vmem:[%s3068_s1 + $0x40] sm:$0xff]   ;;  %v1989_v52 = vld [vmem:[%s2741_s14 + $0x30] sm:$0xf]  ;;  %v2834_v53 = vld [vmem:[%s2741_s14 + $0x34] sm:$0xf] }
  0x1a   : > { %2355 = vmatpush3.bf16.msra.mxu1 %v2572_v7  ;;  %2332 = vmatprep.subr.bf16.mxu0 %v2573_v8  ;;  %v2607_v54 = vld [vmem:[%s3068_s1 + $0x138] sm:$0xff]   ;;  %v2609_v56 = vld [vmem:[%s3068_s1 + $0x130] sm:$0xff]   ;;  %v2014_v58 = vcombine.low %v1989_v52, %v2834_v53  ;;  %v236_v61 = vld [vmem:[%s2741_s14 + $0x24] sm:$0xf]  ;;  %v2041_v7 = vcombine.low %v2798_v40, %v1989_v52 }
  0x1b   : > { %2356 = vmatprep.subr.bf16.mxu1 %v2574_v9  ;;  %v2608_v55 = vld [vmem:[%s3068_s1 + $0x1f8] sm:$0xff]   ;;  %v2610_v60 = vld [vmem:[%s3068_s1 + $0x1f0] sm:$0xff]   ;;  %v2612_v62 = vld [vmem:[%s3068_s1 + $0x128] sm:$0xff]   ;;  %v1978_v3 = vcombine.low %v2787_v35, %v236_v61 }
  0x1c   : > { %v2846_v57 = vld [vmem:[%s2741_s14 + $0x38] sm:$0xf]  ;;  %v2850_v59 = vld [vmem:[%s2741_s14 + $0x3c] sm:$0xf]  ;;  %v2863_v0 = vld [vmem:[%s2741_s14 + $0x40] sm:$0xf] }
  0x1d   : > { %2333 = vmatpush3.bf16.msra.mxu0 %v2573_v8  ;;  %v2015_v63 = vcombine.low %v2846_v57, %v2850_v59  ;;  %v2866_v1 = vld [vmem:[%s2741_s14 + $0x44] sm:$0xf]  ;;  %v2613_v2 = vld [vmem:[%s3068_s1 + $0x1e8] sm:$0xff]   ;;  %v2619_v8 = vld [vmem:[%s3068_s1 + $0x118] sm:$0xff]   ;;  %v2043_v21 = vcombine.low %v2850_v59, %v2863_v0 }
  0x1e   : > { %2357 = vmatpush3.bf16.msra.mxu1 %v2574_v9  ;;  %2334 = vmatprep.subr.bf16.mxu0 %v2575_v10  ;;  %v2016_v4 = vcombine.low %v2863_v0, %v2866_v1  ;;  %v2617_v5 = vld [vmem:[%s3068_s1 + $0x120] sm:$0xff]   ;;  %v2620_v9 = vld [vmem:[%s3068_s1 + $0x1d8] sm:$0xff]   ;;  %v2622_v11 = vld [vmem:[%s3068_s1 + $0x1d0] sm:$0xff]  }
  0x1f   : > { %2358 = vmatprep.subr.bf16.mxu1 %v2576_v14  ;;  %v2618_v6 = vld [vmem:[%s3068_s1 + $0x1e0] sm:$0xff]   ;;  %v2623_v12 = vld [vmem:[%s3068_s1 + $0x108] sm:$0xff]   ;;  %v2628_v16 = vld [vmem:[%s3068_s1 + $0xb8] sm:$0xff]  }
  0x20   : > { %v2624_v13 = vld [vmem:[%s3068_s1 + $0x1c8] sm:$0xff]   ;;  %v2626_v15 = vld [vmem:[%s3068_s1 + $0x1c0] sm:$0xff]   ;;  %v2079_v28 = vld [vmem:[%s2741_s14 + $0x54] sm:$0xf] }
  0x21   : > { %2335 = vmatpush3.bf16.msra.mxu0 %v2575_v10  ;;  %v2621_v10 = vld [vmem:[%s3068_s1 + $0x110] sm:$0xff]   ;;  %v1995_v22 = vld [vmem:[%s2741_s14 + $0x48] sm:$0xf]  ;;  %v2639_v35 = vld [vmem:[%s3068_s1 + $0x98] sm:$0xff]  }
  0x22   : > { %2359 = vmatpush3.bf16.msra.mxu1 %v2576_v14  ;;  %2336 = vmatprep.subr.bf16.mxu0 %v2577_v17  ;;  %v2625_v14 = vld [vmem:[%s3068_s1 + $0x100] sm:$0xff]   ;;  %v2044_v26 = vcombine.low %v2866_v1, %v1995_v22  ;;  %v2642_v38 = vld [vmem:[%s3068_s1 + $0x150] sm:$0xff]   ;;  %v2644_v40 = vld [vmem:[%s3068_s1 + $0x148] sm:$0xff]  }
  0x23   : > { %2360 = vmatprep.subr.bf16.mxu1 %v2578_v18  ;;  %v2660_v59 = vld [vmem:[%s3068_s1 + $0x218] sm:$0xff]   ;;  %v2662_v61 = vld [vmem:[%s3068_s1 + $0x208] sm:$0xff]  }
  0x25   : > { %2337 = vmatpush3.bf16.msra.mxu0 %v2577_v17  ;;  %v2629_v17 = vld [vmem:[%s3068_s1 + $0x178] sm:$0xff]  }
  0x26   : > { %2361 = vmatpush3.bf16.msra.mxu1 %v2578_v18  ;;  %2338 = vmatprep.subr.bf16.mxu0 %v2579_v19  ;;  %v2042_v18 = vcombine.low %v2834_v53, %v2846_v57  ;;  %v2085_v53 = vld [vmem:[%s2741_s14 + $0x6c] sm:$0xf] }
  0x27   : > { %2362 = vmatprep.subr.bf16.mxu1 %v2580_v20 }
  0x29   : > { %2339 = vmatpush3.bf16.msra.mxu0 %v2579_v19  ;;  %v2630_v19 = vld [vmem:[%s3068_s1 + $0xb0] sm:$0xff]  }
  0x2a   : > { %2363 = vmatpush3.bf16.msra.mxu1 %v2580_v20  ;;  %2372 = vmatprep.subr.bf16.mxu0 %v2585_v23  ;;  %v2631_v20 = vld [vmem:[%s3068_s1 + $0x170] sm:$0xff]  }
  0x2b   : > { %2396 = vmatprep.subr.bf16.mxu1 %v2586_v24 }
  0x2c   : > { %2341 = vmatmul.mubr.bf16.vlgmr.msra.gmra.mxu0 %v1923_v25 }
  0x2d   : > { %2365 = vmatmul.mubr.bf16.vlgmr.msra.gmra.mxu1 %v1951_v27  ;;  %2373 = vmatpush3.bf16.msra.mxu0 %v2585_v23  ;;  %v2634_v23 = vld [vmem:[%s3068_s1 + $0xa8] sm:$0xff]   ;;  %v2078_v27 = vld [vmem:[%s2741_s14 + $0x50] sm:$0xf] }
  0x2e   : > { %2397 = vmatpush3.bf16.msra.mxu1 %v2586_v24  ;;  %2374 = vmatprep.subr.bf16.mxu0 %v2587_v29  ;;  %v1996_v24 = vld [vmem:[%s2741_s14 + $0x4c] sm:$0xf] }
  0x2f   : > { %2398 = vmatprep.subr.bf16.mxu1 %v2588_v30  ;;  %2344 = vmatprep.mubr.bf16.mxu0 %v2780_v31 }
  0x30   : > { %2368 = vmatprep.mubr.bf16.mxu1 %v1952_v32  ;;  %v2638_v32 = vld [vmem:[%s3068_s1 + $0x160] sm:$0xff]  }
  0x31   : > { %2375 = vmatpush3.bf16.msra.mxu0 %v2587_v29  ;;  %v2069_v29 = vcombine.low %v1995_v22, %v1996_v24 }
  0x32   : > { %2399 = vmatpush3.bf16.msra.mxu1 %v2588_v30  ;;  %2376 = vmatprep.subr.bf16.mxu0 %v2589_v33  ;;  %v2080_v30 = vld [vmem:[%s2741_s14 + $0x58] sm:$0xf] }
  0x33   : > { %2400 = vmatprep.subr.bf16.mxu1 %v2590_v36  ;;  %v2132_v34 = vcombine.low %v2079_v28, %v2080_v30 }
  0x34   : > { %2345 = vmatmul.mubr.bf16.gmra.mxu0 %v2793_v37 }
  0x35   : > { %2377 = vmatpush3.bf16.msra.mxu0 %v2589_v33  ;;  %2369 = vmatmul.mubr.bf16.gmra.mxu1 %v1953_v39  ;;  %v2104_v33 = vcombine.low %v2078_v27, %v2079_v28  ;;  %v2643_v39 = vld [vmem:[%s3068_s1 + $0x88] sm:$0xff]  }
  0x36   : > { %2401 = vmatpush3.bf16.msra.mxu1 %v2590_v36  ;;  %2378 = vmatprep.subr.bf16.mxu0 %v2591_v41  ;;  %v2640_v36 = vld [vmem:[%s3068_s1 + $0x158] sm:$0xff]  }
  0x37   : > { %2402 = vmatprep.subr.bf16.mxu1 %v2592_v42  ;;  %2388 = vmatprep.mubr.bf16.mxu0 %v1923_v25  ;;  %v2635_v25 = vld [vmem:[%s3068_s1 + $0x168] sm:$0xff]  }
  0x38   : > { %2412 = vmatprep.mubr.bf16.mxu1 %v2013_v43  ;;  %v2081_v43 = vld [vmem:[%s2741_s14 + $0x5c] sm:$0xf] }
  0x39   : > { %2379 = vmatpush3.bf16.msra.mxu0 %v2591_v41  ;;  %v2645_v41 = vld [vmem:[%s3068_s1 + $0x80] sm:$0xff]  }
  0x3a   : > { %2403 = vmatpush3.bf16.msra.mxu1 %v2592_v42  ;;  %2380 = vmatprep.subr.bf16.mxu0 %v2593_v44  ;;  %v2646_v42 = vld [vmem:[%s3068_s1 + $0x140] sm:$0xff]  }
  0x3b   : > { %2404 = vmatprep.subr.bf16.mxu1 %v2594_v45 }
  0x3d   : > { %2381 = vmatpush3.bf16.msra.mxu0 %v2593_v44  ;;  %v2082_v44 = vld [vmem:[%s2741_s14 + $0x60] sm:$0xf] }
  0x3e   : > { %2405 = vmatpush3.bf16.msra.mxu1 %v2594_v45  ;;  %2382 = vmatprep.subr.bf16.mxu0 %v2599_v46  ;;  %v2651_v45 = vld [vmem:[%s3068_s1 + $0x238] sm:$0xff]  }
  0x3f   : > { %2406 = vmatprep.subr.bf16.mxu1 %v2600_v47 }
  0x41   : > { %2383 = vmatpush3.bf16.msra.mxu0 %v2599_v46  ;;  %v2105_v46 = vcombine.low %v2080_v30, %v2081_v43 }
  0x42   : > { %2407 = vmatpush3.bf16.msra.mxu1 %v2600_v47  ;;  %2384 = vmatprep.subr.bf16.mxu0 %v2601_v48  ;;  %v2083_v47 = vld [vmem:[%s2741_s14 + $0x64] sm:$0xf] }
  0x43   : > { %2408 = vmatprep.subr.bf16.mxu1 %v2602_v49 }
  0x45   : > { %2385 = vmatpush3.bf16.msra.mxu0 %v2601_v48  ;;  %v2133_v48 = vcombine.low %v2081_v43, %v2082_v44 }
  0x46   : > { %2409 = vmatpush3.bf16.msra.mxu1 %v2602_v49  ;;  %2386 = vmatprep.subr.bf16.mxu0 %v2603_v50  ;;  %v2084_v49 = vld [vmem:[%s2741_s14 + $0x68] sm:$0xf] }
  0x47   : > { %2410 = vmatprep.subr.bf16.mxu1 %v2604_v51  ;;  %v2134_v52 = vcombine.low %v2083_v47, %v2084_v49 }
  0x49   : > { %2387 = vmatpush3.bf16.msra.mxu0 %v2603_v50  ;;  %v2652_v50 = vld [vmem:[%s3068_s1 + $0x230] sm:$0xff]  }
  0x4a   : > { %2411 = vmatpush3.bf16.msra.mxu1 %v2604_v51  ;;  %2420 = vmatprep.subr.bf16.mxu0 %v2607_v54  ;;  %v2106_v51 = vcombine.low %v2082_v44, %v2083_v47 }
  0x4b   : > { %2444 = vmatprep.subr.bf16.mxu1 %v2608_v55 }
  0x4c   : > { %2389 = vmatmul.mubr.bf16.vlgmr.msra.gmra.mxu0 %v2780_v31  ;;  %v2637_v31 = vld [vmem:[%s3068_s1 + $0xa0] sm:$0xff]  }
  0x4d   : > { %2413 = vmatmul.mubr.bf16.vlgmr.msra.gmra.mxu1 %v2014_v58  ;;  %2421 = vmatpush3.bf16.msra.mxu0 %v2607_v54  ;;  %v2655_v54 = vld [vmem:[%s3068_s1 + $0x228] sm:$0xff]  }
  0x4e   : > { %2445 = vmatpush3.bf16.msra.mxu1 %v2608_v55  ;;  %2422 = vmatprep.subr.bf16.mxu0 %v2609_v56  ;;  %v2086_v55 = vld [vmem:[%s2741_s14 + $0x70] sm:$0xf] }
  0x4f   : > { %2446 = vmatprep.subr.bf16.mxu1 %v2610_v60  ;;  %2392 = vmatprep.mubr.bf16.mxu0 %v2793_v37  ;;  %v2641_v37 = vld [vmem:[%s3068_s1 + $0x90] sm:$0xff]   ;;  %v2135_v57 = vcombine.low %v2085_v53, %v2086_v55 }
  0x50   : > { %2416 = vmatprep.mubr.bf16.mxu1 %v2015_v63 }
  0x51   : > { %2423 = vmatpush3.bf16.msra.mxu0 %v2609_v56  ;;  %v2107_v56 = vcombine.low %v2084_v49, %v2085_v53 }
  0x52   : > { %2447 = vmatpush3.bf16.msra.mxu1 %v2610_v60  ;;  %2424 = vmatprep.subr.bf16.mxu0 %v2612_v62  ;;  %v2661_v60 = vld [vmem:[%s3068_s1 + $0x210] sm:$0xff]  }
  0x53   : > { %2448 = vmatprep.subr.bf16.mxu1 %v2613_v2 }
  0x54   : > { %2393 = vmatmul.mubr.bf16.gmra.mxu0 %v1978_v3 }
  0x55   : > { %2425 = vmatpush3.bf16.msra.mxu0 %v2612_v62  ;;  %2417 = vmatmul.mubr.bf16.gmra.mxu1 %v2016_v4  ;;  %v2663_v62 = vld [vmem:[%s3068_s1 + $0x200] sm:$0xff]  }
  0x56   : > { %2449 = vmatpush3.bf16.msra.mxu1 %v2613_v2  ;;  %2426 = vmatprep.subr.bf16.mxu0 %v2617_v5 }
  0x57   : > { %2450 = vmatprep.subr.bf16.mxu1 %v2618_v6  ;;  %2436 = vmatprep.mubr.bf16.mxu0 %v2041_v7 }
  0x58   : > { %2460 = vmatprep.mubr.bf16.mxu1 %v2014_v58  ;;  %v2659_v58 = vld [vmem:[%s3068_s1 + $0x220] sm:$0xff]  }
  0x59   : > { %2427 = vmatpush3.bf16.msra.mxu0 %v2617_v5 }
  0x5a   : > { %2451 = vmatpush3.bf16.msra.mxu1 %v2618_v6  ;;  %2428 = vmatprep.subr.bf16.mxu0 %v2619_v8 }
  0x5b   : > { %2452 = vmatprep.subr.bf16.mxu1 %v2620_v9 }
  0x5d   : > { %2429 = vmatpush3.bf16.msra.mxu0 %v2619_v8 }
  0x5e   : > { %2453 = vmatpush3.bf16.msra.mxu1 %v2620_v9  ;;  %2430 = vmatprep.subr.bf16.mxu0 %v2621_v10 }
  0x5f   : > { %2454 = vmatprep.subr.bf16.mxu1 %v2622_v11 }
  0x61   : > { %2431 = vmatpush3.bf16.msra.mxu0 %v2621_v10 }
  0x62   : > { %2455 = vmatpush3.bf16.msra.mxu1 %v2622_v11  ;;  %2432 = vmatprep.subr.bf16.mxu0 %v2623_v12 }
  0x63   : > { %2456 = vmatprep.subr.bf16.mxu1 %v2624_v13 }
  0x65   : > { %2433 = vmatpush3.bf16.msra.mxu0 %v2623_v12 }
  0x66   : > { %2457 = vmatpush3.bf16.msra.mxu1 %v2624_v13  ;;  %2434 = vmatprep.subr.bf16.mxu0 %v2625_v14 }
  0x67   : > { %2458 = vmatprep.subr.bf16.mxu1 %v2626_v15 }
  0x69   : > { %2435 = vmatpush3.bf16.msra.mxu0 %v2625_v14 }
  0x6a   : > { %2459 = vmatpush3.bf16.msra.mxu1 %v2626_v15  ;;  %2468 = vmatprep.subr.bf16.mxu0 %v2628_v16 }
  0x6b   : > { %2492 = vmatprep.subr.bf16.mxu1 %v2629_v17 }
  0x6c   : > { %2437 = vmatmul.mubr.bf16.vlgmr.msra.gmra.mxu0 %v2042_v18 }
  0x6d   : > { %2461 = vmatmul.mubr.bf16.vlgmr.msra.gmra.mxu1 %v2015_v63  ;;  %2469 = vmatpush3.bf16.msra.mxu0 %v2628_v16  ;;  %v2087_v63 = vld [vmem:[%s2741_s14 + $0x74] sm:$0xf]  ;;  %s2172_s14 = sshll.u32 %s3085_s16, 5 }
  0x6e   : > { %2493 = vmatpush3.bf16.msra.mxu1 %v2629_v17  ;;  %2470 = vmatprep.subr.bf16.mxu0 %v2630_v19  ;;  %v2160_v0 = vcombine.low %v2086_v55, %v2087_v63  ;;  %s3025_s28 = scalar_lea.vmem %s3070_s3, %s2172_s14  ;;  %s217_s7 = scalar_lea.vmem %s3071_s4, %s2172_s14 }
  0x6f   : > { %2494 = vmatprep.subr.bf16.mxu1 %v2631_v20  ;;  %2440 = vmatprep.mubr.bf16.mxu0 %v2043_v21 }
  0x70   : > { %2464 = vmatprep.mubr.bf16.mxu1 %v2016_v4 }
  0x71   : > { %2471 = vmatpush3.bf16.msra.mxu0 %v2630_v19 }
  0x72   : > { %2495 = vmatpush3.bf16.msra.mxu1 %v2631_v20  ;;  %2472 = vmatprep.subr.bf16.mxu0 %v2634_v23 }
  0x73   : > { %2496 = vmatprep.subr.bf16.mxu1 %v2635_v25 }
  0x74   : > { %2441 = vmatmul.mubr.bf16.gmra.mxu0 %v2044_v26 }
  0x75   : > { %2473 = vmatpush3.bf16.msra.mxu0 %v2634_v23  ;;  %2465 = vmatmul.mubr.bf16.gmra.mxu1 %v2069_v29 }
  0x76   : > { %2497 = vmatpush3.bf16.msra.mxu1 %v2635_v25  ;;  %2474 = vmatprep.subr.bf16.mxu0 %v2637_v31 }
  0x77   : > { %2498 = vmatprep.subr.bf16.mxu1 %v2638_v32  ;;  %2484 = vmatprep.mubr.bf16.mxu0 %v2104_v33 }
  0x78   : > { %2508 = vmatprep.mubr.bf16.mxu1 %v2132_v34 }
  0x79   : > { %2475 = vmatpush3.bf16.msra.mxu0 %v2637_v31 }
  0x7a   : > { %2499 = vmatpush3.bf16.msra.mxu1 %v2638_v32  ;;  %2476 = vmatprep.subr.bf16.mxu0 %v2639_v35 }
  0x7b   : > { %2500 = vmatprep.subr.bf16.mxu1 %v2640_v36 }
  0x7d   : > { %2477 = vmatpush3.bf16.msra.mxu0 %v2639_v35 }
  0x7e   : > { %2501 = vmatpush3.bf16.msra.mxu1 %v2640_v36  ;;  %2478 = vmatprep.subr.bf16.mxu0 %v2641_v37 }
  0x7f   : > { %2502 = vmatprep.subr.bf16.mxu1 %v2642_v38 }
  0x81   : > { %2479 = vmatpush3.bf16.msra.mxu0 %v2641_v37 }
  0x82   : > { %2503 = vmatpush3.bf16.msra.mxu1 %v2642_v38  ;;  %2480 = vmatprep.subr.bf16.mxu0 %v2643_v39 }
  0x83   : > { %2504 = vmatprep.subr.bf16.mxu1 %v2644_v40 }
  0x85   : > { %2481 = vmatpush3.bf16.msra.mxu0 %v2643_v39 }
  0x86   : > { %2505 = vmatpush3.bf16.msra.mxu1 %v2644_v40  ;;  %2482 = vmatprep.subr.bf16.mxu0 %v2645_v41 }
  0x87   : > { %2506 = vmatprep.subr.bf16.mxu1 %v2646_v42 }
  0x89   : > { %2483 = vmatpush3.bf16.msra.mxu0 %v2645_v41 }
  0x8a   : > { %2507 = vmatpush3.bf16.msra.mxu1 %v2646_v42  ;;  %2516 = vmatprep.subr.bf16.mxu0 %v2651_v45 }
  0x8b   : > { %2540 = vmatprep.subr.bf16.mxu1 %v2651_v45 }
  0x8c   : > { %2485 = vmatmul.mubr.bf16.vlgmr.msra.gmra.mxu0 %v2105_v46 }
  0x8d   : > { %2509 = vmatmul.mubr.bf16.vlgmr.msra.gmra.mxu1 %v2133_v48  ;;  %2517 = vmatpush3.bf16.msra.mxu0 %v2651_v45 }
  0x8e   : > { %2548 = vmatpush3.bf16.msra.mxu1 %v2651_v45  ;;  %2518 = vmatprep.subr.bf16.mxu0 %v2652_v50 }
  0x8f   : > { %2541 = vmatprep.subr.bf16.mxu1 %v2652_v50  ;;  %2488 = vmatprep.mubr.bf16.mxu0 %v2106_v51 }
  0x90   : > { %2512 = vmatprep.mubr.bf16.mxu1 %v2134_v52 }
  0x91   : > { %2519 = vmatpush3.bf16.msra.mxu0 %v2652_v50 }
  0x92   : > { %2549 = vmatpush3.bf16.msra.mxu1 %v2652_v50  ;;  %2520 = vmatprep.subr.bf16.mxu0 %v2655_v54 }
  0x93   : > { %2542 = vmatprep.subr.bf16.mxu1 %v2655_v54 }
  0x94   : > { %2489 = vmatmul.mubr.bf16.gmra.mxu0 %v2107_v56 }
  0x95   : > { %2521 = vmatpush3.bf16.msra.mxu0 %v2655_v54  ;;  %2513 = vmatmul.mubr.bf16.gmra.mxu1 %v2135_v57 }
  0x96   : > { %2550 = vmatpush3.bf16.msra.mxu1 %v2655_v54  ;;  %2522 = vmatprep.subr.bf16.mxu0 %v2659_v58 }
  0x97   : > { %2543 = vmatprep.subr.bf16.mxu1 %v2659_v58  ;;  %2532 = vmatprep.mubr.bf16.mxu0 %v2105_v46 }
  0x98   : > { %2536 = vmatprep.mubr.bf16.mxu1 %v2107_v56 }
  0x99   : > { %2523 = vmatpush3.bf16.msra.mxu0 %v2659_v58 }
  0x9a   : > { %2551 = vmatpush3.bf16.msra.mxu1 %v2659_v58  ;;  %2524 = vmatprep.subr.bf16.mxu0 %v2660_v59 }
  0x9b   : > { %2544 = vmatprep.subr.bf16.mxu1 %v2660_v59 }
  0x9d   : > { %2525 = vmatpush3.bf16.msra.mxu0 %v2660_v59 }
  0x9e   : > { %2552 = vmatpush3.bf16.msra.mxu1 %v2660_v59  ;;  %2526 = vmatprep.subr.bf16.mxu0 %v2661_v60 }
  0x9f   : > { %2545 = vmatprep.subr.bf16.mxu1 %v2661_v60 }
  0xa1   : > { %2527 = vmatpush3.bf16.msra.mxu0 %v2661_v60 }
  0xa2   : > { %2553 = vmatpush3.bf16.msra.mxu1 %v2661_v60  ;;  %2528 = vmatprep.subr.bf16.mxu0 %v2662_v61 }
  0xa3   : > { %2546 = vmatprep.subr.bf16.mxu1 %v2662_v61 }
  0xa5   : > { %2529 = vmatpush3.bf16.msra.mxu0 %v2662_v61 }
  0xa6   : > { %2554 = vmatpush3.bf16.msra.mxu1 %v2662_v61  ;;  %2530 = vmatprep.subr.bf16.mxu0 %v2663_v62 }
  0xa7   : > { %2547 = vmatprep.subr.bf16.mxu1 %v2663_v62 }
  0xa9   : > { %2531 = vmatpush3.bf16.msra.mxu0 %v2663_v62 }
  0xaa   : > { %2555 = vmatpush3.bf16.msra.mxu1 %v2663_v62 }
  0xac   : > { %2533 = vmatmul.mubr.bf16.vlgmr.msra.gmra.mxu0 %v2106_v51 }
  0xad   : > { %2537 = vmatmul.mubr.bf16.vlgmr.msra.gmra.mxu1 %v2160_v0 }
  0xec   : > { %v2342_v1 = vpop.f32.mrf.mxu0 }
  0xed   : > { %v2366_v3 = vpop.f32.mrf.mxu1 }
  0xee   : > { %v367_v2 = vpop.f32.mrf.mxu0  ;;  %v564_v54 = vadd.f32 %v2366_v3, %v2342_v1 }
  0xef   : > { %v531_v5 = vpop.f32.mrf.mxu1 }
  0xf0   : > { %v2343_v4 = vpop.f32.mrf.mxu0  ;;  %v562_v58 = vadd.f32 %v531_v5, %v367_v2 }
  0xf1   : > { %v2367_v8 = vpop.f32.mrf.mxu1 }
  0xf2   : > { %v2995_v6 = vpop.f32.mrf.mxu0  ;;  %v565_v62 = vadd.f32 %v2367_v8, %v2343_v4 }
  0xf3   : > { %v2997_v10 = vpop.f32.mrf.mxu1 }
  0xf4   : > { %v2346_v7 = vpop.f32.mrf.mxu0 }
  0xf5   : > { %v2370_v11 = vpop.f32.mrf.mxu1 }
  0xf6   : > { %v383_v9 = vpop.f32.mrf.mxu0  ;;  %v568_v56 = vadd.f32 %v2370_v11, %v2346_v7  ;;  %v563_v7 = vadd.f32 %v2997_v10, %v2995_v6 }
  0xf7   : > { %v547_v13 = vpop.f32.mrf.mxu1 }
  0xf8   : > { %v2347_v12 = vpop.f32.mrf.mxu0  ;;  %v566_v60 = vadd.f32 %v547_v13, %v383_v9 }
  0xf9   : > { %v2371_v16 = vpop.f32.mrf.mxu1 }
  0xfa   : > { %v386_v14 = vpop.f32.mrf.mxu0 }
  0xfb   : > { %v550_v18 = vpop.f32.mrf.mxu1 }
  0xfc   : > { %v567_v9 = vadd.f32 %v550_v18, %v386_v14 }
 0x10c   : > { %v2390_v15 = vpop.f32.mrf.mxu0 }
 0x10d   : > { %v2414_v19 = vpop.f32.mrf.mxu1  ;;  %v722_v59 = vadd.f32 %v2390_v15, %v564_v54 }
 0x10e   : > { %v689_v17 = vpop.f32.mrf.mxu0 }
 0x10f   : > { %v878_v21 = vpop.f32.mrf.mxu1  ;;  %v720_v63 = vadd.f32 %v689_v17, %v562_v58 }
 0x110   : > { %v2391_v20 = vpop.f32.mrf.mxu0 }
 0x111   : > { %v2415_v23 = vpop.f32.mrf.mxu1  ;;  %v909_v2 = vadd.f32 %v878_v21, %v720_v63 }
 0x112   : > { %v692_v22 = vpop.f32.mrf.mxu0 }
 0x113   : > { %v2999_v25 = vpop.f32.mrf.mxu1 }
 0x114   : > { %v2394_v24 = vpop.f32.mrf.mxu0 }
 0x115   : > { %v2418_v27 = vpop.f32.mrf.mxu1  ;;  %v726_v61 = vadd.f32 %v2394_v24, %v568_v56 }
 0x116   : > { %v705_v26 = vpop.f32.mrf.mxu0 }
 0x117   : > { %v894_v29 = vpop.f32.mrf.mxu1  ;;  %v915_v3 = vadd.f32 %v2418_v27, %v726_v61 }
 0x118   : > { %v2395_v28 = vpop.f32.mrf.mxu0 }
 0x119   : > { %v2419_v31 = vpop.f32.mrf.mxu1 }
 0x11a   : > { %v708_v30 = vpop.f32.mrf.mxu0 }
 0x11b   : > { %v3001_v33 = vpop.f32.mrf.mxu1  ;;  %v725_v17 = vadd.f32 %v708_v30, %v567_v9  ;;  %v2211_v9 = vld [vmem:[%s3025_s28 + $0x10] sm:$0xff]  }
 0x11c   : > { %3072 = vst [vmem:[#allocation3_spill] sm:$0xff] %v3001_v33  ;;  %v911_v33 = vadd.f32 %v2414_v19, %v722_v59 }
 0x12c   : > { %v2438_v32 = vpop.f32.mrf.mxu0 }
 0x12d   : > { %v2462_v35 = vpop.f32.mrf.mxu1  ;;  %v1075_v5 = vadd.f32 %v2438_v32, %v911_v33 }
 0x12e   : > { %v1042_v34 = vpop.f32.mrf.mxu0 }
 0x12f   : > { %v1200_v37 = vpop.f32.mrf.mxu1  ;;  %v1073_v15 = vadd.f32 %v1042_v34, %v909_v2  ;;  %v1233_v24 = vadd.f32 %v2462_v35, %v1075_v5  ;;  %v3031_v35 = vld [vmem:[%s3025_s28 + $0x8] sm:$0xff]  }
 0x130   : > { %v2439_v36 = vpop.f32.mrf.mxu0 }
 0x131   : > { %v2463_v39 = vpop.f32.mrf.mxu1  ;;  %v1231_v14 = vadd.f32 %v1200_v37, %v1073_v15 }
 0x132   : > { %v3003_v38 = vpop.f32.mrf.mxu0 }
 0x133   : > { %3073 = vst [vmem:[#allocation4_spill] sm:$0xff] %v3003_v38  ;;  %v3005_v41 = vpop.f32.mrf.mxu1 }
 0x134   : > { %v2442_v40 = vpop.f32.mrf.mxu0  ;;  %3074 = vst [vmem:[#allocation5_spill] sm:$0xff] %v3005_v41  ;;  %v724_v41 = vadd.f32 %v705_v26, %v566_v60 }
 0x135   : > { %v2466_v42 = vpop.f32.mrf.mxu1  ;;  %v1079_v4 = vadd.f32 %v2442_v40, %v915_v3 }
 0x136   : > { %v1058_v43 = vpop.f32.mrf.mxu0  ;;  %v913_v11 = vadd.f32 %v894_v29, %v724_v41 }
 0x137   : > { %v1216_v44 = vpop.f32.mrf.mxu1  ;;  %v1237_v27 = vadd.f32 %v2466_v42, %v1079_v4 }
 0x138   : > { %v2443_v45 = vpop.f32.mrf.mxu0 }
 0x139   : > { %v2467_v46 = vpop.f32.mrf.mxu1 }
 0x13a   : > { %v1061_v47 = vpop.f32.mrf.mxu0  ;;  %v3079_v32 = vld [vmem:[#allocation4_spill] sm:$0xff] }
 0x13b   : > { %v3007_v49 = vpop.f32.mrf.mxu1 }
 0x13c   : > { %3075 = vst [vmem:[#allocation6_spill] sm:$0xff] %v3007_v49  ;;  %v569_v49 = vadd.f32 %v2371_v16, %v2347_v12  ;;  %v721_v12 = vadd.f32 %v692_v22, %v563_v7  ;;  %v3078_v22 = vld [vmem:[#allocation3_spill] sm:$0xff] }
 0x13e   : > { %v910_v10 = vadd.f32 %v2999_v25, %v721_v12 }
 0x140   : > { %v1074_v33 = vadd.f32 %v3079_v32, %v910_v10 }
 0x143   : > { %v3082_v56 = vld [vmem:[#allocation6_spill] sm:$0xff] }
 0x14c   : > { %v2486_v48 = vpop.f32.mrf.mxu0 }
 0x14d   : > { %v2510_v50 = vpop.f32.mrf.mxu1  ;;  %v1422_v18 = vadd.f32 %v2486_v48, %v1233_v24  ;;  %v3037_v48 = vld [vmem:[%s3025_s28] sm:$0xff]   ;;  %v2184_v24 = vunpack.c.l.bf16 %v2211_v9 }
 0x14e   : > { %v1389_v51 = vpop.f32.mrf.mxu0 }
 0x14f   : > { %v3009_v52 = vpop.f32.mrf.mxu1  ;;  %v1420_v34 = vadd.f32 %v1389_v51, %v1231_v14  ;;  %v1586_v25 = vadd.f32 %v2510_v50, %v1422_v18  ;;  %v2180_v51 = vunpack.c.l.bf16 %v3031_v35 }
 0x150   : > { %3076 = vst [vmem:[#allocation7_spill] sm:$0xff] %v3009_v52  ;;  %v2487_v53 = vpop.f32.mrf.mxu0  ;;  %v723_v52 = vadd.f32 %v2391_v20, %v565_v62  ;;  %v1077_v20 = vadd.f32 %v1058_v43, %v913_v11  ;;  %v3034_v43 = vld [vmem:[%s3025_s28 + $0x18] sm:$0xff]   ;;  %v2176_v62 = vunpack.c.l.bf16 %v3037_v48 }
 0x151   : > { %v3011_v55 = vpop.f32.mrf.mxu1 }
 0x152   : > { %3077 = vst [vmem:[#allocation8_spill] sm:$0xff] %v3011_v55  ;;  %v3013_v57 = vpop.f32.mrf.mxu0  ;;  %v727_v55 = vadd.f32 %v2395_v28, %v569_v49  ;;  %v912_v13 = vadd.f32 %v2415_v23, %v723_v52  ;;  %v914_v23 = vadd.f32 %v3078_v22, %v725_v17  ;;  %v1235_v29 = vadd.f32 %v1216_v44, %v1077_v20 }
 0x153   : > { %v3015_v0 = vpop.f32.mrf.mxu1  ;;  %v2177_v22 = vunpack.c.h.bf16 %v3037_v48 }
 0x154   : > { %v2490_v38 = vpop.f32.mrf.mxu0  ;;  %v916_v19 = vadd.f32 %v2419_v31, %v727_v55  ;;  %v1076_v26 = vadd.f32 %v2439_v36, %v912_v13  ;;  %v1078_v36 = vadd.f32 %v1061_v47, %v914_v23  ;;  %v3080_v47 = vld [vmem:[#allocation5_spill] sm:$0xff] }
 0x155   : > { %v2514_v1 = vpop.f32.mrf.mxu1  ;;  %v1426_v30 = vadd.f32 %v2490_v38, %v1237_v27 }
 0x156   : > { %v1405_v8 = vpop.f32.mrf.mxu0  ;;  %v1080_v28 = vadd.f32 %v2443_v45, %v916_v19  ;;  %v1234_v31 = vadd.f32 %v2463_v39, %v1076_v26  ;;  %v2169_v39 = vld [vmem:[%s3069_s2] ss:$0 sm:$0xff]  ;;  %v1236_v58 = vadd.f32 %v3082_v56, %v1078_v36  ;;  %v2181_v26 = vunpack.c.h.bf16 %v3031_v35 }
 0x157   : > { %v1569_v16 = vpop.f32.mrf.mxu1  ;;  %v1424_v41 = vadd.f32 %v1405_v8, %v1235_v29  ;;  %v1590_v49 = vadd.f32 %v2514_v1, %v1426_v30  ;;  %v3081_v52 = vld [vmem:[#allocation7_spill] sm:$0xff] }
 0x158   : > { %v2491_v6 = vpop.f32.mrf.mxu0  ;;  %v1238_v40 = vadd.f32 %v2467_v46, %v1080_v28  ;;  %v1423_v37 = vadd.f32 %v2487_v53, %v1234_v31  ;;  %v1232_v46 = vadd.f32 %v3080_v47, %v1074_v33  ;;  %v1584_v54 = vadd.f32 %v3081_v52, %v1420_v34 }
 0x159   : > { %v2515_v21 = vpop.f32.mrf.mxu1  ;;  %v2188_v53 = vunpack.c.l.bf16 %v3034_v43  ;;  %v1588_v59 = vadd.f32 %v1569_v16, %v1424_v41  ;;  %v3083_v63 = vld [vmem:[#allocation8_spill] sm:$0xff] }
 0x15a   : > { %v1408_v42 = vpop.f32.mrf.mxu0  ;;  %v1427_v44 = vadd.f32 %v2491_v6, %v1238_v40  ;;  %v1587_v1 = vadd.f32 %v3083_v63, %v1423_v37  ;;  %v1421_v3 = vadd.f32 %v3013_v57, %v1232_v46 }
 0x15b   : > { %v1572_v45 = vpop.f32.mrf.mxu1  ;;  %v1425_v11 = vadd.f32 %v1408_v42, %v1236_v58 }
 0x15c   : > { %v1591_v4 = vadd.f32 %v2515_v21, %v1427_v44  ;;  %v1585_v14 = vadd.f32 %v3015_v0, %v1421_v3  ;;  %v2189_v21 = vunpack.c.h.bf16 %v3034_v43 }
 0x15d   : > { %v1589_v18 = vadd.f32 %v1572_v45, %v1425_v11  ;;  %v2185_v45 = vunpack.c.h.bf16 %v2211_v9 }
 0x16c   : > { %v2534_v38 = vpop.f32.mrf.mxu0 }
 0x16d   : > { %v1744_v55 = vadd.f32 %v2534_v38, %v1586_v25  ;;  %v2538_v50 = vpop.f32.mrf.mxu1 }
 0x16e   : > { %v1748_v60 = vadd.f32 %v2538_v50, %v1590_v49  ;;  %v1711_v61 = vpop.f32.mrf.mxu0 }
 0x16f   : > { %v1775_v7 = vadd.f32 %v2169_v39, %v1744_v55  ;;  %v1742_v2 = vadd.f32 %v1711_v61, %v1584_v54  ;;  %v1727_v5 = vpop.f32.mrf.mxu1 }
 0x170   : > { %v1779_v8 = vadd.f32 %v2169_v39, %v1748_v60  ;;  %v1746_v13 = vadd.f32 %v1727_v5, %v1588_v59  ;;  %v2535_v12 = vpop.f32.mrf.mxu0 }
 0x171   : > { %vm1783_vm0 = vcmp.gt.f32.partialorder %v1775_v7, 0.0  ;;  %v1791_v15 = vmul.f32 0.1, %v1775_v7  ;;  %v1773_v16 = vadd.f32 %v2169_v39, %v1742_v2  ;;  %v1745_v17 = vadd.f32 %v2535_v12, %v1587_v1  ;;  %v2539_v19 = vpop.f32.mrf.mxu1 }
 0x172   : > { %v1795_v20 = vmul.f32 0.1, %v1779_v8  ;;  %v1749_v27 = vadd.f32 %v2539_v19, %v1591_v4  ;;  %vm1787_vm1 = vcmp.gt.f32.partialorder %v1779_v8, 0.0  ;;  %v1777_v28 = vadd.f32 %v2169_v39, %v1746_v13  ;;  %v1714_v10 = vpop.f32.mrf.mxu0 }
 0x173   : > { %v1799_v57 = vsel %vm1783_vm0, %v1775_v7, %v1791_v15  ;;  %v1776_v6 = vadd.f32 %v2169_v39, %v1745_v17  ;;  %v1730_v23 = vpop.f32.mrf.mxu1  ;;  %vm1781_vm2 = vcmp.gt.f32.partialorder %v1773_v16, 0.0  ;;  %v1789_v29 = vmul.f32 0.1, %v1773_v16 }
 0x174   : > { %v1823_v31 = vadd.f32 %v2180_v51, %v1799_v57  ;;  %v1803_v32 = vsel %vm1787_vm1, %v1779_v8, %v1795_v20  ;;  %v1780_v33 = vadd.f32 %v2169_v39, %v1749_v27  ;;  %v1743_v34 = vadd.f32 %v1714_v10, %v1585_v14 }
 0x175   : > { %vm1784_vm3 = vcmp.gt.f32.partialorder %v1776_v6, 0.0  ;;  %v1792_v30 = vmul.f32 0.1, %v1776_v6  ;;  %vm1785_vm4 = vcmp.gt.f32.partialorder %v1777_v28, 0.0  ;;  %v1793_v35 = vmul.f32 0.1, %v1777_v28 }
 0x176   : > { %v1747_v40 = vadd.f32 %v1730_v23, %v1589_v18  ;;  %vm1788_vm5 = vcmp.gt.f32.partialorder %v1780_v33, 0.0  ;;  %v1796_v41 = vmul.f32 0.1, %v1780_v33  ;;  %v1774_v42 = vadd.f32 %v2169_v39, %v1743_v34 }
 0x177   : > { %v1800_v36 = vsel %vm1784_vm3, %v1776_v6, %v1792_v30  ;;  %v1827_v43 = vadd.f32 %v2188_v53, %v1803_v32  ;;  %v1797_v25 = vsel %vm1781_vm2, %v1773_v16, %v1789_v29  ;;  %v1801_v51 = vsel %vm1785_vm4, %v1777_v28, %v1793_v35 }
 0x178   : > { %v1824_v0 = vadd.f32 %v2181_v26, %v1800_v36  ;;  %v1778_v37 = vadd.f32 %v2169_v39, %v1747_v40  ;;  %v1804_v44 = vsel %vm1788_vm5, %v1780_v33, %v1796_v41  ;;  %vm1782_vm6 = vcmp.gt.f32.partialorder %v1774_v42, 0.0 }
 0x179   : > { %v1790_v38 = vmul.f32 0.1, %v1774_v42  ;;  %v1828_v47 = vadd.f32 %v2189_v21, %v1804_v44  ;;  %v1821_v54 = vadd.f32 %v2176_v62, %v1797_v25  ;;  %v1825_v56 = vadd.f32 %v2184_v24, %v1801_v51 }
 0x17a   : > { %v2198_v49 = vpack.c.bf16 %v1824_v0, %v1823_v31  ;;  %vm1786_vm7 = vcmp.gt.f32.partialorder %v1778_v37, 0.0  ;;  %v1794_v46 = vmul.f32 0.1, %v1778_v37 }
 0x17b   : > { %v1798_v52 = vsel %vm1782_vm6, %v1774_v42, %v1790_v38  ;;  %v2208_v55 = vpack.c.bf16 %v1828_v47, %v1827_v43 }
 0x17c   : > { %2213 = vst [vmem:[%s217_s7 + $0x8] sm:$0xff] %v2198_v49   ;;  %v1822_v50 = vadd.f32 %v2177_v22, %v1798_v52  ;;  %v1802_v53 = vsel %vm1786_vm7, %v1778_v37, %v1794_v46 }
 0x17d   : > { %v1826_v39 = vadd.f32 %v2185_v45, %v1802_v53  ;;  %2215 = vst [vmem:[%s217_s7 + $0x18] sm:$0xff] %v2208_v55  }
 0x17e   : > { %v2193_v58 = vpack.c.bf16 %v1822_v50, %v1821_v54 }
 0x17f   : > { %v2203_v59 = vpack.c.bf16 %v1826_v39, %v1825_v56 }
 0x180   : > { %2194 = vst [vmem:[%s217_s7] sm:$0xff] %v2193_v58  }
 0x181   : > { %2214 = vst [vmem:[%s217_s7 + $0x10] sm:$0xff] %v2203_v59  }
 0x182 PF: > { %s14_s15 = sadd.s32 1, %s2670_s15  }
 0x183   : > { %p11_p4 = scmp.ge.s32.totalorder %s14_s15, 4  }
 0x185   :  { %13 = sbr.rel (!%p11_p4) target bundleno = 1 (0x1), region = 79 }

</bundles_post_ra>
